<compile_context>
chip_gen: v7x
topology: tpu7x:2x2x1
jax: 0.10.0
libtpu: 0.0.40
codegen_flags: <defaults>
</compile_context>

<pallas_src>
import functools

import jax
import jax.numpy as jnp
from jax.experimental import pallas as pl
from jax.experimental.pallas import tpu as pltpu

D_ENC = 512          # encoder output feature dim (fc1 expects 2*D_ENC = 1024)
H1, H2, OUT = 512, 64, 17
BN_EPS = 1e-5
TI_TILE_MAX = 512    # ~85% of HBM roofline already at 512-wide tiles (measured)
N_TILE_MAX = 8       # keep batch chunks sublane-aligned when the batch is chunked


def stats_mlp_kernel(x_ref, invlen_ref, w1_ref, b1_ref, w2_ref, b2_ref,
                     w3_ref, b3_ref, y_ref, sum_ref, sq_ref, *, ti_total):
    """Grid = (n_chunks, ti_chunks).  One-pass temporal statistics + MLP epilogue."""
    t = pl.program_id(1)

    @pl.when(t == 0)
    def _init():
        sum_ref[...] = jnp.zeros_like(sum_ref)
        sq_ref[...] = jnp.zeros_like(sq_ref)

    # Steady state: pure VPU adds + DMA (no MXU / cross-sublane BN work per tile).
    x = x_ref[...].astype(jnp.float32)            # (Nt, Tt, D); bf16 stream -> f32 accum
    sum_ref[...] += jnp.sum(x, axis=1)
    sq_ref[...] += jnp.sum(x * x, axis=1)

    @pl.when(t == pl.num_programs(1) - 1)
    def _epilogue():
        inv_len = invlen_ref[...]                  # (Nt, 1) = 1 / true sequence length
        s = sum_ref[...]
        sq = sq_ref[...]
        mean = s * inv_len
        # sum_{t < Ti}(x_t - mean)^2 = SQ - 2*mean*S + Ti*mean^2 with Ti = the ORIGINAL
        # number of summed frames (wrapper zero-padding contributes 0 to S and SQ).
        css = sq - 2.0 * mean * s + ti_total * (mean * mean)
        std = jnp.sqrt(jnp.maximum(css, 0.0) * inv_len)

        # fc1 on concat([mean, std], -1) without materializing the concat.
        h = (jnp.dot(mean, w1_ref[0:D_ENC, :], preferred_element_type=jnp.float32)
             + jnp.dot(std, w1_ref[D_ENC:2 * D_ENC, :], preferred_element_type=jnp.float32)
             + b1_ref[...])
        h = jnp.maximum(h, 0.0)
        h = jnp.dot(h, w2_ref[...], preferred_element_type=jnp.float32) + b2_ref[...]
        h = jnp.maximum(h, 0.0)
        y_ref[...] = (jnp.dot(h, w3_ref[...], preferred_element_type=jnp.float32)
                      + b3_ref[...])


def batchnorm_kernel(y_ref, gamma_ref, beta_ref, out_ref):
    # BatchNorm1d(17), training mode (PyTorch default right after __init__): biased
    # batch statistics over N, affine gamma/beta.  Needs the full batch -> own tiny call.
    y = y_ref[...]
    m = jnp.mean(y, axis=0, keepdims=True)
    v = jnp.mean((y - m) ** 2, axis=0, keepdims=True)
    out_ref[...] = gamma_ref[...] * (y - m) * jax.lax.rsqrt(v + BN_EPS) + beta_ref[...]


def transformer_forward(padded_input, input_lengths, params, *,
                        stream_bf16=False, ti_tile_max=TI_TILE_MAX):
    N, Ti, D = padded_input.shape
    assert D == D_ENC, "encoder treated as identity => D must equal 512"

    # ---- tile selection (gated: don't over-grid tiny inputs) ----
    n_tile = N if N <= N_TILE_MAX else N_TILE_MAX
    n_pad = ((N + n_tile - 1) // n_tile) * n_tile
    ti_tile = Ti if Ti <= ti_tile_max else ti_tile_max
    ti_pad = ((Ti + ti_tile - 1) // ti_tile) * ti_tile

    x = padded_input.astype(jnp.bfloat16 if stream_bf16 else jnp.float32)
    if n_pad != N or ti_pad != Ti:
        # Zero frames/rows contribute 0 to sum and sumsq; ti_total keeps exact semantics.
        x = jnp.pad(x, ((0, n_pad - N), (0, ti_pad - Ti), (0, 0)))

    inv_len = jnp.ones((n_pad, 1), jnp.float32)
    inv_len = inv_len.at[:N, 0].set(1.0 / input_lengths.astype(jnp.float32))

    grid = (n_pad // n_tile, ti_pad // ti_tile)

    def const2(shape):
        # Whole-array block, same block index every step -> stays resident in VMEM.
        return pl.BlockSpec(shape, lambda n, t: (0, 0))

    y = pl.pallas_call(
        functools.partial(stats_mlp_kernel, ti_total=float(Ti)),
        out_shape=jax.ShapeDtypeStruct((n_pad, OUT), jnp.float32),
        grid=grid,
        in_specs=[
            pl.BlockSpec((n_tile, ti_tile, D_ENC), lambda n, t: (n, t, 0)),  # x tiles
            pl.BlockSpec((n_tile, 1), lambda n, t: (n, 0)),                  # 1/len
            const2((2 * D_ENC, H1)), const2((1, H1)),
            const2((H1, H2)), const2((1, H2)),
            const2((H2, OUT)), const2((1, OUT)),
        ],
        out_specs=pl.BlockSpec((n_tile, OUT), lambda n, t: (n, 0)),
        scratch_shapes=[pltpu.VMEM((n_tile, D_ENC), jnp.float32),   # running sum
                        pltpu.VMEM((n_tile, D_ENC), jnp.float32)],  # running sumsq
        compiler_params=pltpu.CompilerParams(
            dimension_semantics=("parallel", "arbitrary"),
            vmem_limit_bytes=40 * 1024 * 1024),   # explicit: safe on v7x (64 MiB) too
    )(x, inv_len, params["w1"], params["b1"], params["w2"], params["b2"],
      params["w3"], params["b3"])

    y = y[:N]  # drop batch padding before BatchNorm (batch stats over real rows only)

    vmem = pl.BlockSpec(memory_space=pltpu.MemorySpace.VMEM)
    return pl.pallas_call(
        batchnorm_kernel,
        out_shape=jax.ShapeDtypeStruct((N, OUT), jnp.float32),
        in_specs=[vmem, vmem, vmem],
        out_specs=vmem,
    )(y, params["gamma"], params["beta"])


def init_params(key):
    """Deterministic synthetic init: xavier_uniform for weight matrices (dim>1),
    PyTorch Linear-style uniform for biases, BN gamma=1 / beta=0."""
    def xavier(k, fan_in, fan_out):
        bound = (6.0 / (fan_in + fan_out)) ** 0.5
        return jax.random.uniform(k, (fan_in, fan_out), jnp.float32, -bound, bound)

    k1, k2, k3, kb1, kb2, kb3 = jax.random.split(key, 6)
    return {
        "w1": xavier(k1, 2 * D_ENC, H1),
        "b1": jax.random.uniform(kb1, (1, H1), jnp.float32, -1.0, 1.0) / (2 * D_ENC) ** 0.5,
        "w2": xavier(k2, H1, H2),
        "b2": jax.random.uniform(kb2, (1, H2), jnp.float32, -1.0, 1.0) / H1 ** 0.5,
        "w3": xavier(k3, H2, OUT),
        "b3": jax.random.uniform(kb3, (1, OUT), jnp.float32, -1.0, 1.0) / H2 ** 0.5,
        "gamma": jnp.ones((1, OUT), jnp.float32),
        "beta": jnp.zeros((1, OUT), jnp.float32),
    }


def _reference_forward(x, input_lengths, params):
    """Pure-JAX reference mirroring the PyTorch graph (encoder = identity)."""
    lens = input_lengths.astype(jnp.float32).reshape(-1, 1, 1)
    mean = jnp.sum(x, axis=1, keepdims=True) / lens
    std = jnp.sqrt(jnp.sum(jnp.square(x - mean), axis=1, keepdims=True) / lens)
    res = jnp.concatenate([mean, std], axis=2)[:, 0, :].reshape(-1, 2 * D_ENC)
    res = jnp.maximum(res @ params["w1"] + params["b1"], 0.0)
    res = jnp.maximum(res @ params["w2"] + params["b2"], 0.0)
    res = res @ params["w3"] + params["b3"]
    m = jnp.mean(res, axis=0, keepdims=True)
    v = jnp.mean((res - m) ** 2, axis=0, keepdims=True)
    return params["gamma"] * (res - m) / jnp.sqrt(v + BN_EPS) + params["beta"]


if __name__ == "__main__":
    key = jax.random.PRNGKey(0)
    kx, kp, kx2, kl2 = jax.random.split(key, 4)
    params = init_params(kp)

    # --- test 1: toy shape, single grid step (gated small-input path) ---
    N, Ti = 2, 8
    x = jax.random.normal(kx, (N, Ti, D_ENC), jnp.float32)       # padded_input: N x Ti x D
    lens = jnp.array([8, 6], dtype=jnp.int32)                    # true lengths (one < Ti)
    out = transformer_forward(x, lens, params)
    jax.block_until_ready(out)
    assert out.shape == (N, OUT) and out.dtype == jnp.float32
    ref = _reference_forward(x, lens, params)
    assert jnp.allclose(out, ref, atol=1e-3, rtol=1e-3)

    # --- test 2: exercise the pipelined Ti reduction + batch chunking (small shapes,
    #             small forced tile so the accumulator / pl.when path really runs) ---
    N2, Ti2 = 16, 20                                   # 2 batch chunks of 8; Ti 20 -> pad 24
    x2 = jax.random.normal(kx2, (N2, Ti2, D_ENC), jnp.float32)
    lens2 = jax.random.randint(kl2, (N2,), 5, Ti2 + 1).astype(jnp.int32)
    out2 = transformer_forward(x2, lens2, params, ti_tile_max=8)
    jax.block_until_ready(out2)
    ref2 = _reference_forward(x2, lens2, params)
    assert jnp.allclose(out2, ref2, atol=1e-3, rtol=1e-3)

    # --- test 3: bf16 streaming of x (HBM-traffic-halving option), f32 accumulation ---
    out3 = transformer_forward(x, lens, params, stream_bf16=True)
    jax.block_until_ready(out3)
    ref3 = _reference_forward(x.astype(jnp.bfloat16).astype(jnp.float32), lens, params)
    assert jnp.allclose(out3, ref3, atol=5e-3, rtol=5e-3)

    print("KERNEL_OK")
</pallas_src>

<mosaic_0001>
module attributes {stable_mosaic.version = 11 : i64} {
  func.func @stats_mlp_kernel(%arg0: i32, %arg1: i32, %arg2: memref<2x8x512xf32, #tpu.memory_space<vmem>>, %arg3: memref<2x1xf32, #tpu.memory_space<vmem>>, %arg4: memref<1024x512xf32, #tpu.memory_space<vmem>>, %arg5: memref<1x512xf32, #tpu.memory_space<vmem>>, %arg6: memref<512x64xf32, #tpu.memory_space<vmem>>, %arg7: memref<1x64xf32, #tpu.memory_space<vmem>>, %arg8: memref<64x17xf32, #tpu.memory_space<vmem>>, %arg9: memref<1x17xf32, #tpu.memory_space<vmem>>, %arg10: memref<2x17xf32, #tpu.memory_space<vmem>>, %arg11: memref<2x512xf32, #tpu.memory_space<vmem>>, %arg12: memref<2x512xf32, #tpu.memory_space<vmem>>) attributes {dimension_semantics = [#tpu.dimension_semantics<parallel>, #tpu.dimension_semantics<arbitrary>], iteration_bounds = array<i64: 1, 1>, scalar_prefetch = 0 : i64, scratch_operands = 2 : i64, tpu.core_type = #tpu.core_type<tc>, window_params = [{transform_indices = @transform_0, window_bounds = array<i64: 2, 8, 512>}, {transform_indices = @transform_1, window_bounds = array<i64: 2, 1>}, {pipeline_mode = #tpu.pipeline_mode<synchronous>, transform_indices = @transform_2, window_bounds = array<i64: 1024, 512>}, {pipeline_mode = #tpu.pipeline_mode<synchronous>, transform_indices = @transform_3, window_bounds = array<i64: 1, 512>}, {pipeline_mode = #tpu.pipeline_mode<synchronous>, transform_indices = @transform_4, window_bounds = array<i64: 512, 64>}, {pipeline_mode = #tpu.pipeline_mode<synchronous>, transform_indices = @transform_5, window_bounds = array<i64: 1, 64>}, {pipeline_mode = #tpu.pipeline_mode<synchronous>, transform_indices = @transform_6, window_bounds = array<i64: 64, 17>}, {pipeline_mode = #tpu.pipeline_mode<synchronous>, transform_indices = @transform_7, window_bounds = array<i64: 1, 17>}, {transform_indices = @transform_8, window_bounds = array<i64: 2, 17>}]} {
    %c0_i32 = arith.constant 0 : i32
    %0 = arith.cmpi eq, %arg1, %c0_i32 : i32
    %1 = arith.extui %0 : i1 to i32
    %c0_i32_0 = arith.constant 0 : i32
    %2 = arith.cmpi ne, %1, %c0_i32_0 : i32
    scf.if %2 {
      %cst_14 = arith.constant 0.000000e+00 : f32
      %16 = vector.broadcast %cst_14 : f32 to vector<2x512xf32>
      %c0_15 = arith.constant 0 : index
      %c0_16 = arith.constant 0 : index
      %17 = vector.load %arg11[%c0_15, %c0_16] : memref<2x512xf32, #tpu.memory_space<vmem>>, vector<2x512xf32>
      tpu.vector_store %arg11[%c0_15, %c0_16], %16 {strides = array<i32>} : memref<2x512xf32, #tpu.memory_space<vmem>>, vector<2x512xf32>,
      %cst_17 = arith.constant 0.000000e+00 : f32
      %18 = vector.broadcast %cst_17 : f32 to vector<2x512xf32>
      %c0_18 = arith.constant 0 : index
      %c0_19 = arith.constant 0 : index
      %19 = vector.load %arg12[%c0_18, %c0_19] : memref<2x512xf32, #tpu.memory_space<vmem>>, vector<2x512xf32>
      tpu.vector_store %arg12[%c0_18, %c0_19], %18 {strides = array<i32>} : memref<2x512xf32, #tpu.memory_space<vmem>>, vector<2x512xf32>,
    } else {
    }
    %c0 = arith.constant 0 : index
    %c0_1 = arith.constant 0 : index
    %c0_2 = arith.constant 0 : index
    %3 = vector.load %arg2[%c0, %c0_1, %c0_2] : memref<2x8x512xf32, #tpu.memory_space<vmem>>, vector<2x8x512xf32>
    %c0_3 = arith.constant 0 : index
    %c0_4 = arith.constant 0 : index
    %4 = vector.load %arg11[%c0_3, %c0_4] : memref<2x512xf32, #tpu.memory_space<vmem>>, vector<2x512xf32>
    %cst = arith.constant dense<0.000000e+00> : vector<2x512xf32>
    %5 = vector.multi_reduction <add>, %3, %cst [1] : vector<2x8x512xf32> to vector<2x512xf32>
    %6 = arith.addf %4, %5 : vector<2x512xf32>
    %c0_5 = arith.constant 0 : index
    %c0_6 = arith.constant 0 : index
    %7 = vector.load %arg11[%c0_5, %c0_6] : memref<2x512xf32, #tpu.memory_space<vmem>>, vector<2x512xf32>
    tpu.vector_store %arg11[%c0_5, %c0_6], %6 {strides = array<i32>} : memref<2x512xf32, #tpu.memory_space<vmem>>, vector<2x512xf32>,
    %c0_7 = arith.constant 0 : index
    %c0_8 = arith.constant 0 : index
    %8 = vector.load %arg12[%c0_7, %c0_8] : memref<2x512xf32, #tpu.memory_space<vmem>>, vector<2x512xf32>
    %9 = arith.mulf %3, %3 : vector<2x8x512xf32>
    %cst_9 = arith.constant dense<0.000000e+00> : vector<2x512xf32>
    %10 = vector.multi_reduction <add>, %9, %cst_9 [1] : vector<2x8x512xf32> to vector<2x512xf32>
    %11 = arith.addf %8, %10 : vector<2x512xf32>
    %c0_10 = arith.constant 0 : index
    %c0_11 = arith.constant 0 : index
    %12 = vector.load %arg12[%c0_10, %c0_11] : memref<2x512xf32, #tpu.memory_space<vmem>>, vector<2x512xf32>
    tpu.vector_store %arg12[%c0_10, %c0_11], %11 {strides = array<i32>} : memref<2x512xf32, #tpu.memory_space<vmem>>, vector<2x512xf32>,
    %c0_i32_12 = arith.constant 0 : i32
    %13 = arith.cmpi eq, %arg1, %c0_i32_12 : i32
    %14 = arith.extui %13 : i1 to i32
    %c0_i32_13 = arith.constant 0 : i32
    %15 = arith.cmpi ne, %14, %c0_i32_13 : i32
    scf.if %15 {
      %c0_14 = arith.constant 0 : index
      %c0_15 = arith.constant 0 : index
      %16 = vector.load %arg3[%c0_14, %c0_15] : memref<2x1xf32, #tpu.memory_space<vmem>>, vector<2x1xf32>
      %c0_16 = arith.constant 0 : index
      %c0_17 = arith.constant 0 : index
      %17 = vector.load %arg11[%c0_16, %c0_17] : memref<2x512xf32, #tpu.memory_space<vmem>>, vector<2x512xf32>
      %c0_18 = arith.constant 0 : index
      %c0_19 = arith.constant 0 : index
      %18 = vector.load %arg12[%c0_18, %c0_19] : memref<2x512xf32, #tpu.memory_space<vmem>>, vector<2x512xf32>
      %19 = vector.broadcast %16 : vector<2x1xf32> to vector<2x512xf32>
      %20 = arith.mulf %17, %19 : vector<2x512xf32>
      %cst_20 = arith.constant 2.000000e+00 : f32
      %21 = vector.broadcast %cst_20 : f32 to vector<2x512xf32>
      %22 = arith.mulf %21, %20 : vector<2x512xf32>
      %23 = arith.mulf %22, %17 : vector<2x512xf32>
      %24 = arith.subf %18, %23 : vector<2x512xf32>
      %25 = arith.mulf %20, %20 : vector<2x512xf32>
      %cst_21 = arith.constant 8.000000e+00 : f32
      %26 = vector.broadcast %cst_21 : f32 to vector<2x512xf32>
      %27 = arith.mulf %26, %25 : vector<2x512xf32>
      %28 = arith.addf %24, %27 : vector<2x512xf32>
      %cst_22 = arith.constant 0.000000e+00 : f32
      %29 = vector.broadcast %cst_22 : f32 to vector<2x512xf32>
      %30 = arith.maximumf %28, %29 : vector<2x512xf32>
      %31 = vector.broadcast %16 : vector<2x1xf32> to vector<2x512xf32>
      %32 = arith.mulf %30, %31 : vector<2x512xf32>
      %33 = math.sqrt %32 : vector<2x512xf32>
      %c0_23 = arith.constant 0 : index
      %c0_24 = arith.constant 0 : index
      %34 = vector.load %arg4[%c0_23, %c0_24] : memref<1024x512xf32, #tpu.memory_space<vmem>>, vector<512x512xf32>
      %cst_25 = arith.constant dense<0.000000e+00> : vector<2x512xf32>
      %35 = tpu.matmul %20, %34, %cst_25 {dimension_numbers = #tpu.dot_dimension_numbers<[1], [0], [0], [1], [0, 0, 1, 1], [], []>} : vector<2x512xf32>, vector<512x512xf32>, vector<2x512xf32> -> vector<2x512xf32>
      %c512 = arith.constant 512 : index
      %c0_26 = arith.constant 0 : index
      %36 = vector.load %arg4[%c512, %c0_26] : memref<1024x512xf32, #tpu.memory_space<vmem>>, vector<512x512xf32>
      %cst_27 = arith.constant dense<0.000000e+00> : vector<2x512xf32>
      %37 = tpu.matmul %33, %36, %cst_27 {dimension_numbers = #tpu.dot_dimension_numbers<[1], [0], [0], [1], [0, 0, 1, 1], [], []>} : vector<2x512xf32>, vector<512x512xf32>, vector<2x512xf32> -> vector<2x512xf32>
      %38 = arith.addf %35, %37 : vector<2x512xf32>
      %c0_28 = arith.constant 0 : index
      %c0_29 = arith.constant 0 : index
      %39 = vector.load %arg5[%c0_28, %c0_29] : memref<1x512xf32, #tpu.memory_space<vmem>>, vector<1x512xf32>
      %40 = vector.broadcast %39 : vector<1x512xf32> to vector<2x512xf32>
      %41 = arith.addf %38, %40 : vector<2x512xf32>
      %cst_30 = arith.constant 0.000000e+00 : f32
      %42 = vector.broadcast %cst_30 : f32 to vector<2x512xf32>
      %43 = arith.maximumf %41, %42 : vector<2x512xf32>
      %c0_31 = arith.constant 0 : index
      %c0_32 = arith.constant 0 : index
      %44 = vector.load %arg6[%c0_31, %c0_32] : memref<512x64xf32, #tpu.memory_space<vmem>>, vector<512x64xf32>
      %cst_33 = arith.constant dense<0.000000e+00> : vector<2x64xf32>
      %45 = tpu.matmul %43, %44, %cst_33 {dimension_numbers = #tpu.dot_dimension_numbers<[1], [0], [0], [1], [0, 0, 1, 1], [], []>} : vector<2x512xf32>, vector<512x64xf32>, vector<2x64xf32> -> vector<2x64xf32>
      %c0_34 = arith.constant 0 : index
      %c0_35 = arith.constant 0 : index
      %46 = vector.load %arg7[%c0_34, %c0_35] : memref<1x64xf32, #tpu.memory_space<vmem>>, vector<1x64xf32>
      %47 = vector.broadcast %46 : vector<1x64xf32> to vector<2x64xf32>
      %48 = arith.addf %45, %47 : vector<2x64xf32>
      %cst_36 = arith.constant 0.000000e+00 : f32
      %49 = vector.broadcast %cst_36 : f32 to vector<2x64xf32>
      %50 = arith.maximumf %48, %49 : vector<2x64xf32>
      %c0_37 = arith.constant 0 : index
      %c0_38 = arith.constant 0 : index
      %51 = vector.load %arg8[%c0_37, %c0_38] : memref<64x17xf32, #tpu.memory_space<vmem>>, vector<64x17xf32>
      %cst_39 = arith.constant dense<0.000000e+00> : vector<2x17xf32>
      %52 = tpu.matmul %50, %51, %cst_39 {dimension_numbers = #tpu.dot_dimension_numbers<[1], [0], [0], [1], [0, 0, 1, 1], [], []>} : vector<2x64xf32>, vector<64x17xf32>, vector<2x17xf32> -> vector<2x17xf32>
      %c0_40 = arith.constant 0 : index
      %c0_41 = arith.constant 0 : index
      %53 = vector.load %arg9[%c0_40, %c0_41] : memref<1x17xf32, #tpu.memory_space<vmem>>, vector<1x17xf32>
      %54 = vector.broadcast %53 : vector<1x17xf32> to vector<2x17xf32>
      %55 = arith.addf %52, %54 : vector<2x17xf32>
      %c0_42 = arith.constant 0 : index
      %c0_43 = arith.constant 0 : index
      %56 = vector.load %arg10[%c0_42, %c0_43] : memref<2x17xf32, #tpu.memory_space<vmem>>, vector<2x17xf32>
      tpu.vector_store %arg10[%c0_42, %c0_43], %55 {strides = array<i32>} : memref<2x17xf32, #tpu.memory_space<vmem>>, vector<2x17xf32>,
    } else {
    }
    return
  }
  func.func @transform_0(%arg0: i32, %arg1: i32) -> (i32, i32, i32) {
    %c0_i32 = arith.constant 0 : i32
    %c0_i32_0 = arith.constant 0 : i32
    return %arg0, %arg1, %c0_i32 : i32, i32, i32
  }
  func.func @transform_1(%arg0: i32, %arg1: i32) -> (i32, i32) {
    %c0_i32 = arith.constant 0 : i32
    %c0_i32_0 = arith.constant 0 : i32
    return %arg0, %c0_i32 : i32, i32
  }
  func.func @transform_2(%arg0: i32, %arg1: i32) -> (i32, i32) {
    %c0_i32 = arith.constant 0 : i32
    %c0_i32_0 = arith.constant 0 : i32
    %c0_i32_1 = arith.constant 0 : i32
    return %c0_i32, %c0_i32_0 : i32, i32
  }
  func.func @transform_3(%arg0: i32, %arg1: i32) -> (i32, i32) {
    %c0_i32 = arith.constant 0 : i32
    %c0_i32_0 = arith.constant 0 : i32
    %c0_i32_1 = arith.constant 0 : i32
    return %c0_i32, %c0_i32_0 : i32, i32
  }
  func.func @transform_4(%arg0: i32, %arg1: i32) -> (i32, i32) {
    %c0_i32 = arith.constant 0 : i32
    %c0_i32_0 = arith.constant 0 : i32
    %c0_i32_1 = arith.constant 0 : i32
    return %c0_i32, %c0_i32_0 : i32, i32
  }
  func.func @transform_5(%arg0: i32, %arg1: i32) -> (i32, i32) {
    %c0_i32 = arith.constant 0 : i32
    %c0_i32_0 = arith.constant 0 : i32
    %c0_i32_1 = arith.constant 0 : i32
    return %c0_i32, %c0_i32_0 : i32, i32
  }
  func.func @transform_6(%arg0: i32, %arg1: i32) -> (i32, i32) {
    %c0_i32 = arith.constant 0 : i32
    %c0_i32_0 = arith.constant 0 : i32
    %c0_i32_1 = arith.constant 0 : i32
    return %c0_i32, %c0_i32_0 : i32, i32
  }
  func.func @transform_7(%arg0: i32, %arg1: i32) -> (i32, i32) {
    %c0_i32 = arith.constant 0 : i32
    %c0_i32_0 = arith.constant 0 : i32
    %c0_i32_1 = arith.constant 0 : i32
    return %c0_i32, %c0_i32_0 : i32, i32
  }
  func.func @transform_8(%arg0: i32, %arg1: i32) -> (i32, i32) {
    %c0_i32 = arith.constant 0 : i32
    %c0_i32_0 = arith.constant 0 : i32
    return %arg0, %c0_i32 : i32, i32
  }
}

</mosaic_0001>

<bundles_post_ra>
// kernel: tpu_custom_call.1
= control target key start
LH: loop header
LB: loop body
LE: loop exit
PB: predicated region body
PF: predicated region fallthrough
CT: control target
= control target key end

     0   :  { %13 = vsyncpa [#allocation5], 0  ;;  %s3107_s0 = inlined_call_operand.hbm [shape: f32[2,8,512], index: 0, kind: input, shape index: {}]   ;;  %s3108_s1 = inlined_call_operand.vmem [shape: f32[2,1], index: 1, kind: input, shape index: {}]   ;;  %s3109_s2 = inlined_call_operand.hbm [shape: f32[1024,512], index: 2, kind: input, shape index: {}]   ;;  %s3110_s3 = inlined_call_operand.hbm [shape: f32[1,512], index: 3, kind: input, shape index: {}]   ;;  %s3111_s4 = inlined_call_operand.vmem [shape: f32[512,64], index: 4, kind: input, shape index: {}]   ;;  %s3112_s5 = inlined_call_operand.hbm [shape: f32[1,64], index: 5, kind: input, shape index: {}]   ;;  %s3113_s6 = inlined_call_operand.vmem [shape: f32[64,17], index: 6, kind: input, shape index: {}]   ;;  %s3114_s7 = inlined_call_operand.hbm [shape: f32[1,17], index: 7, kind: input, shape index: {}]   ;;  %s3115_s8 = inlined_call_operand.hbm [shape: f32[2,17], index: 8, kind: output, shape index: {}]  }
   0x1   :  { %14 = vsyncpa [#allocation8], 0 }
   0x2   :  { %15 = vsyncpa [#allocation11], 0 }
   0x3   :  { %16 = vsyncpa [#allocation6], 0  ;;  %s2688_s27 = smov [#allocation7]   ;;  %s2689_s29 = smov [#allocation10]  }
   0x4   :  { %s36_s28 = sshll.u32 %s2688_s27, 4  ;;  %s61_s30 = sshll.u32 %s2689_s29, 4  ;;  %s37_s28 = int_to_ptr.vmem [resolvable:$true] %s36_s28  ;;  %s2747_s30 = int_to_ptr.vmem [resolvable:$true] %s61_s30 }
   0x5   :  { %s2548_s11 = scalar_lea.hbm %s3109_s2, 65536 }
   0x6   :  { %p2549_p0 = scmp.ne.s32.totalorder %s3109_s2, %s2548_s11  ;;  %p2552_p1 = scmp.lt.u32.totalorder %s2548_s11, %s3109_s2 }
   0x8   :  { %p2554_p2 = pnand %p2552_p1, %p2549_p0 }
   0xa   :  { %2557 = shalt.err (!%p2554_p2)
}
   0xb   :  { %s2558_s16 = scalar_lea.vmem %s37_s28, 65536  ;;  %p2563_p4 = scmp.lt.s32.totalorder %s37_s28, %s37_s28 }
   0xc   :  { %p2559_p3 = scmp.ne.s32.totalorder %s37_s28, %s2558_s16  ;;  %p2564_p5 = scmp.lt.s32.totalorder %s2558_s16, %s2558_s16 }
   0xe   :  { %p2565_p6 = por %p2564_p5, %p2563_p4 }
  0x10   :  { %p2566_p7 = pnand %p2565_p6, %p2559_p3 }
  0x12   :  { %2569 = shalt.err (!%p2566_p7)
}
  0x13   :  { %s2690_s17 = smov 512   ;;  %s2691_s18 = smov 32  }
  0x14   :  { %42 = dma.hbm_to_vmem [thread:$0]  %s3109_s2, 65536, %s37_s28, [#allocation8], %s2690_s17, %s2690_s17, %s2691_s18  }
  0x15   :  { %s2570_s23 = scalar_lea.hbm %s3112_s5, 16 }
  0x16   :  { %p2571_p8 = scmp.ne.s32.totalorder %s3112_s5, %s2570_s23  ;;  %p2574_p9 = scmp.lt.u32.totalorder %s2570_s23, %s3112_s5 }
  0x18   :  { %p2576_p10 = pnand %p2574_p9, %p2571_p8 }
  0x1a   :  { %2579 = shalt.err (!%p2576_p10)
}
  0x1b   :  { %s2580_s29 = scalar_lea.vmem %s2747_s30, 16  ;;  %s2584_s2 = scalar_lea.vmem %s2747_s30, 32 }
  0x1c   :  { %p2581_p11 = scmp.ne.s32.totalorder %s2747_s30, %s2580_s29  ;;  %p2585_p12 = scmp.lt.s32.totalorder %s2747_s30, %s2747_s30 }
  0x1d   :  { %p2586_p13 = scmp.lt.s32.totalorder %s2584_s2, %s2580_s29 }
  0x1f   :  { %p2587_p0 = por %p2586_p13, %p2585_p12 }
  0x21   :  { %p2588_p1 = pnand %p2587_p0, %p2581_p11 }
  0x23   :  { %2591 = shalt.err (!%p2588_p1)
}
  0x24   :  { %64 = dma.hbm_to_vmem [thread:$0]  %s3112_s5, 16, %s2747_s30, [#allocation11]  }
  0x25   :  { %s2692_s10 = smov [#allocation4]   ;;  %s2693_s12 = smov [#allocation9]  }
  0x26   :  { %s22_s11 = sshll.u32 %s2692_s10, 4  ;;  %s49_s13 = sshll.u32 %s2693_s12, 4  ;;  %s23_s11 = int_to_ptr.vmem [resolvable:$true] %s22_s11  ;;  %s50_s13 = int_to_ptr.vmem [resolvable:$true] %s49_s13 }
  0x27   :  { %s2592_s16 = scalar_lea.hbm %s3107_s0, 1024 }
  0x28   :  { %p2593_p2 = scmp.ne.s32.totalorder %s3107_s0, %s2592_s16  ;;  %p2596_p3 = scmp.lt.u32.totalorder %s2592_s16, %s3107_s0 }
  0x2a   :  { %p2598_p4 = pnand %p2596_p3, %p2593_p2 }
  0x2c   :  { %2601 = shalt.err (!%p2598_p4)
}
  0x2d   :  { %s2602_s5 = scalar_lea.vmem %s23_s11, 1024  ;;  %p2607_p6 = scmp.lt.s32.totalorder %s23_s11, %s23_s11 }
  0x2e   :  { %p2603_p5 = scmp.ne.s32.totalorder %s23_s11, %s2602_s5  ;;  %p2608_p7 = scmp.lt.s32.totalorder %s2602_s5, %s2602_s5 }
  0x30   :  { %p2609_p8 = por %p2608_p7, %p2607_p6 }
  0x32   :  { %p2610_p9 = pnand %p2609_p8, %p2603_p5 }
  0x34   :  { %2613 = shalt.err (!%p2610_p9)
}
  0x35   :  { %28 = dma.hbm_to_vmem [thread:$0]  %s3107_s0, 1024, %s23_s11, [#allocation5], %s2690_s17, %s2690_s17, %s2691_s18  }
  0x36   :  { %s2614_s26 = scalar_lea.hbm %s3110_s3, 64 }
  0x37   :  { %p2615_p10 = scmp.ne.s32.totalorder %s3110_s3, %s2614_s26  ;;  %p2618_p11 = scmp.lt.u32.totalorder %s2614_s26, %s3110_s3 }
  0x39   :  { %p2620_p12 = pnand %p2618_p11, %p2615_p10 }
  0x3b   :  { %2623 = shalt.err (!%p2620_p12)
}
  0x3c   :  { %s2624_s9 = scalar_lea.vmem %s50_s13, 64  ;;  %p2629_p0 = scmp.lt.s32.totalorder %s50_s13, %s50_s13 }
  0x3d   :  { %p2625_p13 = scmp.ne.s32.totalorder %s50_s13, %s2624_s9  ;;  %p2630_p1 = scmp.lt.s32.totalorder %s2624_s9, %s2624_s9 }
  0x3f   :  { %p2631_p2 = por %p2630_p1, %p2629_p0 }
  0x41   :  { %p2632_p3 = pnand %p2631_p2, %p2625_p13 }
  0x43   :  { %2635 = shalt.err (!%p2632_p3)
}
  0x44   :  { %52 = dma.hbm_to_vmem [thread:$0]  %s3110_s3, 64, %s50_s13, [#allocation8]  }
  0x45   :  { %s2694_s18 = smov [#allocation12]   ;;  %s2636_s14 = scalar_lea.hbm %s3114_s7, 16 }
  0x46   :  { %s73_s10 = sshll.u32 %s2694_s18, 4  ;;  %p2637_p4 = scmp.ne.s32.totalorder %s3114_s7, %s2636_s14  ;;  %s74_s10 = int_to_ptr.vmem [resolvable:$true] %s73_s10 }
  0x47   :  { %p2640_p5 = scmp.lt.u32.totalorder %s2636_s14, %s3114_s7 }
  0x49   :  { %p2642_p6 = pnand %p2640_p5, %p2637_p4 }
  0x4b   :  { %2645 = shalt.err (!%p2642_p6)
}
  0x4c   :  { %s2646_s21 = scalar_lea.vmem %s74_s10, 16  ;;  %s2650_s3 = scalar_lea.vmem %s74_s10, 32 }
  0x4d   :  { %p2647_p7 = scmp.ne.s32.totalorder %s74_s10, %s2646_s21  ;;  %p2651_p8 = scmp.lt.s32.totalorder %s74_s10, %s74_s10 }
  0x4e   :  { %p2652_p9 = scmp.lt.s32.totalorder %s2650_s3, %s2646_s21 }
  0x50   :  { %p2653_p10 = por %p2652_p9, %p2651_p8 }
  0x52   :  { %p2654_p11 = pnand %p2653_p10, %p2647_p7 }
  0x54   :  { %2657 = shalt.err (!%p2654_p11)
}
  0x55   :  { %76 = dma.hbm_to_vmem [thread:$0]  %s3114_s7, 16, %s74_s10, [#allocation11]  }
  0x56   :  { %2680 = dma.done.wait [#allocation5], 1024  }
  0x57   :  { %2681 = vsyncadd [#allocation5], 4294966272 }
  0x58   :  { %2682 = dma.done.wait [#allocation8], 65600  }
  0x59   :  { %2683 = vsyncadd [#allocation8], 4294901696 }
  0x5a   :  { %2684 = dma.done.wait [#allocation11], 32  }
  0x5b   :  { %2685 = vsyncadd [#allocation11], 4294967264  ;;  %v2695_v0 = vmov 0   ;;  %v325_v1 = vld [vmem:[%s3108_s1] sm:$0x3]  ;;  %v613_v2 = vld [vmem:[#allocation7 + $0x808] sm:$0xff] }
  0x5c   :  { %2545 = vset.pattern.permute.xlu0 %v2695_v0  ;;  %v617_v3 = vld [vmem:[#allocation7 + $0x828] sm:$0xff]  ;;  %v615_v5 = vld [vmem:[#allocation7 + $0x818] sm:$0xff]  ;;  %v612_v7 = vld [vmem:[#allocation7 + $0x800] sm:$0xff]  ;;  %vm202_vm0 = vcmask 1041409   ;;  %vm204_vm1 = vcmask 1043459   ;;  %vm206_vm2 = vcmask 1045509  }
  0x5d   :  { %330 = vperm.xlu0 %2545, %v325_v1   ;;  %v1931_v4 = vpack.c.bf16 %v617_v3, %v613_v2  ;;  %v619_v6 = vld [vmem:[#allocation7 + $0x838] sm:$0xff]  ;;  %v616_v9 = vld [vmem:[#allocation7 + $0x820] sm:$0xff]  ;;  %v614_v10 = vld [vmem:[#allocation7 + $0x810] sm:$0xff]  ;;  %vm208_vm3 = vcmask 1047559   ;;  %vm2699_vm6 = vmmov 0   ;;  %vm1737_vm7 = vcmask 523264  }
  0x5e   :  { %v2059_v8 = vpack.c.bf16 %v619_v6, %v615_v5  ;;  %v618_v11 = vld [vmem:[#allocation7 + $0x830] sm:$0xff]  ;;  %v1933_v12 = vpack.c.bf16 %v616_v9, %v612_v7  ;;  %v621_v14 = vld [vmem:[#allocation7 + $0x848] sm:$0xff]  ;;  %v623_v16 = vld [vmem:[#allocation7 + $0x858] sm:$0xff]  ;;  %s2701_s24 = smov [#allocation13]   ;;  %vm1811_vm8 = vcmask 132096  }
  0x5f   :  { %1932 = vmatprep.subr.bf16.mxu0 %v1931_v4  ;;  %v2061_v13 = vpack.c.bf16 %v618_v11, %v614_v10  ;;  %v625_v15 = vld [vmem:[#allocation7 + $0x868] sm:$0xff]  ;;  %v627_v18 = vld [vmem:[#allocation7 + $0x878] sm:$0xff]  ;;  %v620_v19 = vld [vmem:[#allocation7 + $0x840] sm:$0xff] }
  0x60   :  { %2060 = vmatprep.subr.bf16.mxu1 %v2059_v8  ;;  %v1935_v17 = vpack.c.bf16 %v625_v15, %v621_v14  ;;  %v624_v20 = vld [vmem:[#allocation7 + $0x860] sm:$0xff]  ;;  %1934 = vmatpush1.bf16.msra.mxu0 %v1933_v12  ;;  %v2063_v21 = vpack.c.bf16 %v627_v18, %v623_v16  ;;  %v622_v23 = vld [vmem:[#allocation7 + $0x850] sm:$0xff]  ;;  %v629_v25 = vld [vmem:[#allocation7 + $0x888] sm:$0xff] }
  0x61   :  { %2062 = vmatpush1.bf16.msra.mxu1 %v2061_v13  ;;  %v1937_v22 = vpack.c.bf16 %v624_v20, %v620_v19  ;;  %v626_v24 = vld [vmem:[#allocation7 + $0x870] sm:$0xff]  ;;  %v633_v27 = vld [vmem:[#allocation7 + $0x8a8] sm:$0xff]  ;;  %v631_v28 = vld [vmem:[#allocation7 + $0x898] sm:$0xff] }
  0x62   :  { %1936 = vmatprep.subr.bf16.mxu0 %v1935_v17  ;;  %v2065_v26 = vpack.c.bf16 %v626_v24, %v622_v23  ;;  %v635_v29 = vld [vmem:[#allocation7 + $0x8b8] sm:$0xff]  ;;  %2064 = vmatprep.subr.bf16.mxu1 %v2063_v21  ;;  %v1939_v30 = vpack.c.bf16 %v633_v27, %v629_v25  ;;  %v628_v32 = vld [vmem:[#allocation7 + $0x880] sm:$0xff]  ;;  %v630_v34 = vld [vmem:[#allocation7 + $0x890] sm:$0xff] }
  0x63   :  { %v2067_v31 = vpack.c.bf16 %v635_v29, %v631_v28  ;;  %v632_v33 = vld [vmem:[#allocation7 + $0x8a0] sm:$0xff]  ;;  %v634_v35 = vld [vmem:[#allocation7 + $0x8b0] sm:$0xff]  ;;  %v637_v36 = vld [vmem:[#allocation7 + $0x8c8] sm:$0xff] }
  0x64   :  { %v641_v37 = vld [vmem:[#allocation7 + $0x8e8] sm:$0xff]  ;;  %1938 = vmatpush1.bf16.msra.mxu0 %v1937_v22  ;;  %v1941_v38 = vpack.c.bf16 %v632_v33, %v628_v32  ;;  %v2069_v39 = vpack.c.bf16 %v634_v35, %v630_v34  ;;  %v639_v40 = vld [vmem:[#allocation7 + $0x8d8] sm:$0xff]  ;;  %v636_v42 = vld [vmem:[#allocation7 + $0x8c0] sm:$0xff] }
  0x65   :  { %2066 = vmatpush1.bf16.msra.mxu1 %v2065_v26  ;;  %v643_v41 = vld [vmem:[#allocation7 + $0x8f8] sm:$0xff]  ;;  %1940 = vmatprep.subr.bf16.mxu0 %v1939_v30  ;;  %v1943_v43 = vpack.c.bf16 %v641_v37, %v637_v36  ;;  %v640_v45 = vld [vmem:[#allocation7 + $0x8e0] sm:$0xff]  ;;  %v638_v46 = vld [vmem:[#allocation7 + $0x8d0] sm:$0xff] }
  0x66   :  { %2068 = vmatprep.subr.bf16.mxu1 %v2067_v31  ;;  %v2071_v44 = vpack.c.bf16 %v643_v41, %v639_v40  ;;  %v642_v47 = vld [vmem:[#allocation7 + $0x8f0] sm:$0xff]  ;;  %v645_v48 = vld [vmem:[#allocation7 + $0x908] sm:$0xff]  ;;  %v647_v50 = vld [vmem:[#allocation7 + $0x918] sm:$0xff]  ;;  %v1945_v52 = vpack.c.bf16 %v640_v45, %v636_v42 }
  0x67   :  { %v649_v49 = vld [vmem:[#allocation7 + $0x928] sm:$0xff]  ;;  %v651_v51 = vld [vmem:[#allocation7 + $0x938] sm:$0xff]  ;;  %v2073_v53 = vpack.c.bf16 %v642_v47, %v638_v46  ;;  %v644_v54 = vld [vmem:[#allocation7 + $0x900] sm:$0xff] }
  0x68   :  { %1942 = vmatpush1.bf16.msra.mxu0 %v1941_v38  ;;  %v648_v55 = vld [vmem:[#allocation7 + $0x920] sm:$0xff]  ;;  %v1947_v56 = vpack.c.bf16 %v649_v49, %v645_v48  ;;  %v2075_v57 = vpack.c.bf16 %v651_v51, %v647_v50  ;;  %v646_v58 = vld [vmem:[#allocation7 + $0x910] sm:$0xff]  ;;  %v653_v60 = vld [vmem:[#allocation7 + $0x948] sm:$0xff] }
  0x69   :  { %2070 = vmatpush1.bf16.msra.mxu1 %v2069_v39  ;;  %1944 = vmatprep.subr.bf16.mxu0 %v1943_v43  ;;  %v650_v59 = vld [vmem:[#allocation7 + $0x930] sm:$0xff]  ;;  %v657_v61 = vld [vmem:[#allocation7 + $0x968] sm:$0xff]  ;;  %v655_v62 = vld [vmem:[#allocation7 + $0x958] sm:$0xff]  ;;  %v1949_v0 = vpack.c.bf16 %v648_v55, %v644_v54 }
  0x6a   :  { %2072 = vmatprep.subr.bf16.mxu1 %v2071_v44  ;;  %v659_v63 = vld [vmem:[#allocation7 + $0x978] sm:$0xff]  ;;  %v2077_v1 = vpack.c.bf16 %v650_v59, %v646_v58  ;;  %v652_v2 = vld [vmem:[#allocation7 + $0x940] sm:$0xff]  ;;  %v1951_v4 = vpack.c.bf16 %v657_v61, %v653_v60  ;;  %v654_v6 = vld [vmem:[#allocation7 + $0x950] sm:$0xff] }
  0x6b   :  { %v656_v3 = vld [vmem:[#allocation7 + $0x960] sm:$0xff]  ;;  %v2079_v5 = vpack.c.bf16 %v659_v63, %v655_v62  ;;  %v658_v7 = vld [vmem:[#allocation7 + $0x970] sm:$0xff]  ;;  %v661_v8 = vld [vmem:[#allocation7 + $0x988] sm:$0xff] }
  0x6c   :  { %1946 = vmatpush1.bf16.msra.mxu0 %v1945_v52  ;;  %v665_v9 = vld [vmem:[#allocation7 + $0x9a8] sm:$0xff]  ;;  %v663_v10 = vld [vmem:[#allocation7 + $0x998] sm:$0xff]  ;;  %v1953_v12 = vpack.c.bf16 %v656_v3, %v652_v2  ;;  %v2081_v13 = vpack.c.bf16 %v658_v7, %v654_v6  ;;  %v660_v14 = vld [vmem:[#allocation7 + $0x980] sm:$0xff] }
  0x6d   :  { %2074 = vmatpush1.bf16.msra.mxu1 %v2073_v53  ;;  %1948 = vmatprep.subr.bf16.mxu0 %v1947_v56  ;;  %v667_v11 = vld [vmem:[#allocation7 + $0x9b8] sm:$0xff]  ;;  %v664_v15 = vld [vmem:[#allocation7 + $0x9a0] sm:$0xff]  ;;  %v1955_v16 = vpack.c.bf16 %v665_v9, %v661_v8  ;;  %v662_v18 = vld [vmem:[#allocation7 + $0x990] sm:$0xff] }
  0x6e   :  { %2076 = vmatprep.subr.bf16.mxu1 %v2075_v57  ;;  %v2083_v17 = vpack.c.bf16 %v667_v11, %v663_v10  ;;  %v666_v19 = vld [vmem:[#allocation7 + $0x9b0] sm:$0xff]  ;;  %v669_v20 = vld [vmem:[#allocation7 + $0x9c8] sm:$0xff]  ;;  %v671_v22 = vld [vmem:[#allocation7 + $0x9d8] sm:$0xff]  ;;  %v1957_v24 = vpack.c.bf16 %v664_v15, %v660_v14 }
  0x6f   :  { %v673_v21 = vld [vmem:[#allocation7 + $0x9e8] sm:$0xff]  ;;  %v675_v23 = vld [vmem:[#allocation7 + $0x9f8] sm:$0xff]  ;;  %v2085_v25 = vpack.c.bf16 %v666_v19, %v662_v18  ;;  %v668_v28 = vld [vmem:[#allocation7 + $0x9c0] sm:$0xff] }
  0x70   :  { %1950 = vmatpush1.bf16.msra.mxu0 %v1949_v0  ;;  %v1959_v26 = vpack.c.bf16 %v673_v21, %v669_v20  ;;  %v2087_v27 = vpack.c.bf16 %v675_v23, %v671_v22  ;;  %v672_v29 = vld [vmem:[#allocation7 + $0x9e0] sm:$0xff]  ;;  %v670_v30 = vld [vmem:[#allocation7 + $0x9d0] sm:$0xff]  ;;  %v677_v32 = vld [vmem:[#allocation7 + $0xa08] sm:$0xff] }
  0x71   :  { %2078 = vmatpush1.bf16.msra.mxu1 %v2077_v1  ;;  %1952 = vmatprep.subr.bf16.mxu0 %v1951_v4  ;;  %v674_v31 = vld [vmem:[#allocation7 + $0x9f0] sm:$0xff]  ;;  %v681_v33 = vld [vmem:[#allocation7 + $0xa28] sm:$0xff]  ;;  %v679_v34 = vld [vmem:[#allocation7 + $0xa18] sm:$0xff]  ;;  %v1961_v38 = vpack.c.bf16 %v672_v29, %v668_v28 }
  0x72   :  { %2080 = vmatprep.subr.bf16.mxu1 %v2079_v5  ;;  %v683_v35 = vld [vmem:[#allocation7 + $0xa38] sm:$0xff]  ;;  %v676_v36 = vld [vmem:[#allocation7 + $0xa00] sm:$0xff]  ;;  %v2089_v39 = vpack.c.bf16 %v674_v31, %v670_v30  ;;  %v678_v40 = vld [vmem:[#allocation7 + $0xa10] sm:$0xff]  ;;  %v1963_v43 = vpack.c.bf16 %v681_v33, %v677_v32 }
  0x73   :  { %v680_v37 = vld [vmem:[#allocation7 + $0xa20] sm:$0xff]  ;;  %v682_v41 = vld [vmem:[#allocation7 + $0xa30] sm:$0xff]  ;;  %v685_v42 = vld [vmem:[#allocation7 + $0xa48] sm:$0xff]  ;;  %v2091_v47 = vpack.c.bf16 %v683_v35, %v679_v34 }
  0x74   :  { %1954 = vmatpush1.bf16.msra.mxu0 %v1953_v12  ;;  %v689_v44 = vld [vmem:[#allocation7 + $0xa68] sm:$0xff]  ;;  %v687_v45 = vld [vmem:[#allocation7 + $0xa58] sm:$0xff]  ;;  %v684_v48 = vld [vmem:[#allocation7 + $0xa40] sm:$0xff]  ;;  %v1965_v50 = vpack.c.bf16 %v680_v37, %v676_v36  ;;  %v2093_v54 = vpack.c.bf16 %v682_v41, %v678_v40 }
  0x75   :  { %2082 = vmatpush1.bf16.msra.mxu1 %v2081_v13  ;;  %1956 = vmatprep.subr.bf16.mxu0 %v1955_v16  ;;  %v691_v46 = vld [vmem:[#allocation7 + $0xa78] sm:$0xff]  ;;  %v688_v49 = vld [vmem:[#allocation7 + $0xa60] sm:$0xff]  ;;  %v686_v51 = vld [vmem:[#allocation7 + $0xa50] sm:$0xff]  ;;  %v1967_v55 = vpack.c.bf16 %v689_v44, %v685_v42 }
  0x76   :  { %2084 = vmatprep.subr.bf16.mxu1 %v2083_v17  ;;  %v690_v52 = vld [vmem:[#allocation7 + $0xa70] sm:$0xff]  ;;  %v693_v53 = vld [vmem:[#allocation7 + $0xa88] sm:$0xff]  ;;  %v2095_v56 = vpack.c.bf16 %v691_v46, %v687_v45  ;;  %v695_v58 = vld [vmem:[#allocation7 + $0xa98] sm:$0xff]  ;;  %v1969_v60 = vpack.c.bf16 %v688_v49, %v684_v48 }
  0x77   :  { %v697_v57 = vld [vmem:[#allocation7 + $0xaa8] sm:$0xff]  ;;  %v699_v59 = vld [vmem:[#allocation7 + $0xab8] sm:$0xff]  ;;  %v2097_v61 = vpack.c.bf16 %v690_v52, %v686_v51  ;;  %v692_v62 = vld [vmem:[#allocation7 + $0xa80] sm:$0xff] }
  0x78   :  { %1958 = vmatpush1.bf16.msra.mxu0 %v1957_v24  ;;  %v696_v63 = vld [vmem:[#allocation7 + $0xaa0] sm:$0xff]  ;;  %v1971_v0 = vpack.c.bf16 %v697_v57, %v693_v53  ;;  %v2099_v1 = vpack.c.bf16 %v699_v59, %v695_v58  ;;  %v694_v2 = vld [vmem:[#allocation7 + $0xa90] sm:$0xff]  ;;  %v701_v4 = vld [vmem:[#allocation7 + $0xac8] sm:$0xff] }
  0x79   :  { %2086 = vmatpush1.bf16.msra.mxu1 %v2085_v25  ;;  %1960 = vmatprep.subr.bf16.mxu0 %v1959_v26  ;;  %v698_v3 = vld [vmem:[#allocation7 + $0xab0] sm:$0xff]  ;;  %v705_v5 = vld [vmem:[#allocation7 + $0xae8] sm:$0xff]  ;;  %v703_v6 = vld [vmem:[#allocation7 + $0xad8] sm:$0xff]  ;;  %v1973_v8 = vpack.c.bf16 %v696_v63, %v692_v62 }
  0x7a   :  { %2088 = vmatprep.subr.bf16.mxu1 %v2087_v27  ;;  %v707_v7 = vld [vmem:[#allocation7 + $0xaf8] sm:$0xff]  ;;  %v2101_v9 = vpack.c.bf16 %v698_v3, %v694_v2  ;;  %v700_v10 = vld [vmem:[#allocation7 + $0xac0] sm:$0xff]  ;;  %v1975_v12 = vpack.c.bf16 %v705_v5, %v701_v4  ;;  %v702_v14 = vld [vmem:[#allocation7 + $0xad0] sm:$0xff] }
  0x7b   :  { %v704_v11 = vld [vmem:[#allocation7 + $0xae0] sm:$0xff]  ;;  %v2103_v13 = vpack.c.bf16 %v707_v7, %v703_v6  ;;  %v706_v15 = vld [vmem:[#allocation7 + $0xaf0] sm:$0xff]  ;;  %v709_v16 = vld [vmem:[#allocation7 + $0xb08] sm:$0xff] }
  0x7c   :  { %1962 = vmatpush1.bf16.msra.mxu0 %v1961_v38  ;;  %v713_v17 = vld [vmem:[#allocation7 + $0xb28] sm:$0xff]  ;;  %v711_v18 = vld [vmem:[#allocation7 + $0xb18] sm:$0xff]  ;;  %v1977_v20 = vpack.c.bf16 %v704_v11, %v700_v10  ;;  %v2105_v21 = vpack.c.bf16 %v706_v15, %v702_v14  ;;  %v708_v22 = vld [vmem:[#allocation7 + $0xb00] sm:$0xff]  ;;  %v2696_v10 = vmov 1983009808  }
  0x7d   :  { %2090 = vmatpush1.bf16.msra.mxu1 %v2089_v39  ;;  %1964 = vmatprep.subr.bf16.mxu0 %v1963_v43  ;;  %v715_v19 = vld [vmem:[#allocation7 + $0xb38] sm:$0xff]  ;;  %v712_v23 = vld [vmem:[#allocation7 + $0xb20] sm:$0xff]  ;;  %v1979_v24 = vpack.c.bf16 %v713_v17, %v709_v16  ;;  %v710_v26 = vld [vmem:[#allocation7 + $0xb10] sm:$0xff]  ;;  %v2824_v11 = vunpack.c.l.s4 %v2696_v10 }
  0x7e   :  { %2092 = vmatprep.subr.bf16.mxu1 %v2091_v47  ;;  %v2107_v25 = vpack.c.bf16 %v715_v19, %v711_v18  ;;  %v714_v27 = vld [vmem:[#allocation7 + $0xb30] sm:$0xff]  ;;  %v717_v28 = vld [vmem:[#allocation7 + $0xb48] sm:$0xff]  ;;  %v719_v30 = vld [vmem:[#allocation7 + $0xb58] sm:$0xff]  ;;  %v1981_v32 = vpack.c.bf16 %v712_v23, %v708_v22 }
  0x7f   :  { %v721_v29 = vld [vmem:[#allocation7 + $0xb68] sm:$0xff]  ;;  %v723_v31 = vld [vmem:[#allocation7 + $0xb78] sm:$0xff]  ;;  %v2109_v33 = vpack.c.bf16 %v714_v27, %v710_v26  ;;  %v716_v34 = vld [vmem:[#allocation7 + $0xb40] sm:$0xff] }
  0x80   :  { %1966 = vmatpush1.bf16.msra.mxu0 %v1965_v50  ;;  %v720_v35 = vld [vmem:[#allocation7 + $0xb60] sm:$0xff]  ;;  %v1983_v36 = vpack.c.bf16 %v721_v29, %v717_v28  ;;  %v2111_v37 = vpack.c.bf16 %v723_v31, %v719_v30  ;;  %v718_v38 = vld [vmem:[#allocation7 + $0xb50] sm:$0xff]  ;;  %v725_v40 = vld [vmem:[#allocation7 + $0xb88] sm:$0xff] }
  0x81   :  { %2094 = vmatpush1.bf16.msra.mxu1 %v2093_v54  ;;  %1968 = vmatprep.subr.bf16.mxu0 %v1967_v55  ;;  %v722_v39 = vld [vmem:[#allocation7 + $0xb70] sm:$0xff]  ;;  %v729_v41 = vld [vmem:[#allocation7 + $0xba8] sm:$0xff]  ;;  %v727_v42 = vld [vmem:[#allocation7 + $0xb98] sm:$0xff]  ;;  %v1985_v44 = vpack.c.bf16 %v720_v35, %v716_v34 }
  0x82   :  { %2096 = vmatprep.subr.bf16.mxu1 %v2095_v56  ;;  %v731_v43 = vld [vmem:[#allocation7 + $0xbb8] sm:$0xff]  ;;  %v2113_v45 = vpack.c.bf16 %v722_v39, %v718_v38  ;;  %v724_v46 = vld [vmem:[#allocation7 + $0xb80] sm:$0xff]  ;;  %v1987_v48 = vpack.c.bf16 %v729_v41, %v725_v40  ;;  %v726_v50 = vld [vmem:[#allocation7 + $0xb90] sm:$0xff] }
  0x83   :  { %v728_v47 = vld [vmem:[#allocation7 + $0xba0] sm:$0xff]  ;;  %v2115_v49 = vpack.c.bf16 %v731_v43, %v727_v42  ;;  %v730_v51 = vld [vmem:[#allocation7 + $0xbb0] sm:$0xff]  ;;  %v733_v52 = vld [vmem:[#allocation7 + $0xbc8] sm:$0xff] }
  0x84   :  { %1970 = vmatpush1.bf16.msra.mxu0 %v1969_v60  ;;  %v737_v53 = vld [vmem:[#allocation7 + $0xbe8] sm:$0xff]  ;;  %v735_v54 = vld [vmem:[#allocation7 + $0xbd8] sm:$0xff]  ;;  %v102_v56 = vld [vmem:[#allocation4 + $0x20] sm:$0xff]  ;;  %v1989_v62 = vpack.c.bf16 %v728_v47, %v724_v46  ;;  %v2117_v63 = vpack.c.bf16 %v730_v51, %v726_v50 }
  0x85   :  { %2098 = vmatpush1.bf16.msra.mxu1 %v2097_v61  ;;  %1972 = vmatprep.subr.bf16.mxu0 %v1971_v0  ;;  %v739_v55 = vld [vmem:[#allocation7 + $0xbf8] sm:$0xff]  ;;  %v103_v57 = vld [vmem:[#allocation4 + $0x28] sm:$0xff]  ;;  %v104_v58 = vld [vmem:[#allocation4 + $0x30] sm:$0xff]  ;;  %v1991_v2 = vpack.c.bf16 %v737_v53, %v733_v52 }
  0x86   :  { %2100 = vmatprep.subr.bf16.mxu1 %v2099_v1  ;;  %v98_v59 = vld [vmem:[#allocation4] sm:$0xff]  ;;  %v99_v60 = vld [vmem:[#allocation4 + $0x8] sm:$0xff]  ;;  %v105_v61 = vld [vmem:[#allocation4 + $0x38] sm:$0xff]  ;;  %v2119_v3 = vpack.c.bf16 %v739_v55, %v735_v54  ;;  %v137_v14 = vrot.slane %v103_v57, 4  ;;  %v143_v17 = vrot.slane %v104_v58, 4  ;;  %v219_v26 = vmul.f32 %v103_v57, %v103_v57 }
  0x87   :  { %v732_v0 = vld [vmem:[#allocation7 + $0xbc0] sm:$0xff]  ;;  %v734_v4 = vld [vmem:[#allocation7 + $0xbd0] sm:$0xff]  ;;  %v741_v6 = vld [vmem:[#allocation7 + $0xc08] sm:$0xff]  ;;  %v149_v18 = vrot.slane %v105_v61, 4  ;;  %v113_v22 = vrot.slane %v99_v60, 4  ;;  %v220_v27 = vmul.f32 %v104_v58, %v104_v58  ;;  %v221_v28 = vmul.f32 %v105_v61, %v105_v61 }
  0x88   :  { %1974 = vmatpush1.bf16.msra.mxu0 %v1973_v8  ;;  %v736_v1 = vld [vmem:[#allocation7 + $0xbe0] sm:$0xff]  ;;  %v738_v5 = vld [vmem:[#allocation7 + $0xbf0] sm:$0xff]  ;;  %v745_v7 = vld [vmem:[#allocation7 + $0xc28] sm:$0xff]  ;;  %v138_v34 = vadd.f32 %v137_v14, %v103_v57  ;;  %v144_v35 = vadd.f32 %v143_v17, %v104_v58  ;;  %v215_v38 = vmul.f32 %v99_v60, %v99_v60  ;;  %v252_v42 = vrot.slane %v219_v26, 4 }
  0x89   :  { %2102 = vmatpush1.bf16.msra.mxu1 %v2101_v9  ;;  %1976 = vmatprep.subr.bf16.mxu0 %v1975_v12  ;;  %v743_v8 = vld [vmem:[#allocation7 + $0xc18] sm:$0xff]  ;;  %v168_v12 = vlaneseq  ;;  %v100_v15 = vld [vmem:[#allocation4 + $0x10] sm:$0xff]  ;;  %v1993_v19 = vpack.c.bf16 %v736_v1, %v732_v0  ;;  %v1995_v23 = vpack.c.bf16 %v745_v7, %v741_v6  ;;  %v258_v43 = vrot.slane %v220_v27, 4 }
  0x8a   :  { %2104 = vmatprep.subr.bf16.mxu1 %v2103_v13  ;;  %v747_v9 = vld [vmem:[#allocation7 + $0xc38] sm:$0xff]  ;;  %v131_v13 = vrot.slane %v102_v56, 4  ;;  %v119_v29 = vrot.slane %v100_v15, 4  ;;  %v216_v39 = vmul.f32 %v100_v15, %v100_v15  ;;  %v114_v46 = vadd.f32 %v113_v22, %v99_v60 }
  0x8b   :  { %v101_v16 = vld [vmem:[#allocation4 + $0x18] sm:$0xff]  ;;  %v139_v50 = vrot.slane %v138_v34, 2  ;;  %v145_v51 = vrot.slane %v144_v35, 2  ;;  %v228_v54 = vrot.slane %v215_v38, 4  ;;  %v253_v58 = vadd.f32 %v252_v42, %v219_v26 }
  0x8c   :  { %1978 = vmatpush1.bf16.msra.mxu0 %v1977_v20  ;;  %v2121_v20 = vpack.c.bf16 %v738_v5, %v734_v4  ;;  %v125_v30 = vrot.slane %v101_v16, 4  ;;  %v132_v31 = vadd.f32 %v131_v13, %v102_v56  ;;  %v217_v40 = vmul.f32 %v101_v16, %v101_v16 }
  0x8d   :  { %2106 = vmatpush1.bf16.msra.mxu1 %v2105_v21  ;;  %1980 = vmatprep.subr.bf16.mxu0 %v1979_v24  ;;  %v107_v21 = vrot.slane %v98_v59, 4  ;;  %v2123_v24 = vpack.c.bf16 %v747_v9, %v743_v8  ;;  %v120_v47 = vadd.f32 %v119_v29, %v100_v15  ;;  %v234_v55 = vrot.slane %v216_v39, 4 }
  0x8e   :  { %2108 = vmatprep.subr.bf16.mxu1 %v2107_v25  ;;  %v218_v25 = vmul.f32 %v102_v56, %v102_v56  ;;  %v240_v56 = vrot.slane %v217_v40, 4  ;;  %v115_v0 = vrot.slane %v114_v46, 2  ;;  %v140_v60 = vadd.f32 %v139_v50, %v138_v34 }
  0x8f   :  { %v121_v1 = vrot.slane %v120_v47, 2  ;;  %v229_v6 = vadd.f32 %v228_v54, %v215_v38  ;;  %v235_v7 = vadd.f32 %v234_v55, %v216_v39  ;;  %v254_v10 = vrot.slane %v253_v58, 2 }
  0x90   :  { %1982 = vmatpush1.bf16.msra.mxu0 %v1981_v32  ;;  %v214_v32 = vmul.f32 %v98_v59, %v98_v59  ;;  %v246_v41 = vrot.slane %v218_v25, 4  ;;  %v241_v8 = vadd.f32 %v240_v56, %v217_v40  ;;  %v116_v15 = vadd.f32 %v115_v0, %v114_v46 }
  0x91   :  { %2110 = vmatpush1.bf16.msra.mxu1 %v2109_v33  ;;  %1984 = vmatprep.subr.bf16.mxu0 %v1983_v36  ;;  %v2826_v33 = vshrl.u32 %v168_v12, 7  ;;  %v150_v36 = vadd.f32 %v149_v18, %v105_v61  ;;  %v259_v61 = vadd.f32 %v258_v43, %v220_v27  ;;  %v255_v27 = vadd.f32 %v254_v10, %v253_v58 }
  0x92   :  { %2112 = vmatprep.subr.bf16.mxu1 %v2111_v37  ;;  %v167_v37 = vunpack.c.0.s8 %v2824_v11  ;;  %v222_v53 = vrot.slane %v214_v32, 4  ;;  %v247_v57 = vadd.f32 %v246_v41, %v218_v25  ;;  %v242_v25 = vrot.slane %v241_v8, 2 }
  0x93   :  { %v151_v52 = vrot.slane %v150_v36, 2  ;;  %v260_v12 = vrot.slane %v259_v61, 2 }
  0x94   :  { %1986 = vmatpush1.bf16.msra.mxu0 %v1985_v44  ;;  %v264_v44 = vrot.slane %v221_v28, 4  ;;  %v223_v5 = vadd.f32 %v222_v53, %v214_v32  ;;  %v248_v9 = vrot.slane %v247_v57, 2  ;;  %v243_v43 = vadd.f32 %v242_v25, %v241_v8 }
  0x95   :  { %2114 = vmatpush1.bf16.msra.mxu1 %v2113_v45  ;;  %1988 = vmatprep.subr.bf16.mxu0 %v1987_v48  ;;  %v108_v45 = vadd.f32 %v107_v21, %v98_v59  ;;  %v126_v48 = vadd.f32 %v125_v30, %v101_v16  ;;  %v152_v4 = vadd.f32 %v151_v52, %v150_v36 }
  0x96   :  { %2116 = vmatprep.subr.bf16.mxu1 %v2115_v49  ;;  %v133_v49 = vrot.slane %v132_v31, 2  ;;  %v122_v16 = vadd.f32 %v121_v1, %v120_v47  ;;  %v224_v22 = vrot.slane %v223_v5, 2  ;;  %v249_v26 = vadd.f32 %v248_v9, %v247_v57 }
  0x97   :  { %v153_v21 = vrot.slane %v152_v4, 1  ;;  %v244_v58 = vrot.slane %v243_v43, 1 }
  0x98   :  { %1990 = vmatpush1.bf16.msra.mxu0 %v1989_v62  ;;  %v265_v62 = vadd.f32 %v264_v44, %v221_v28  ;;  %v134_v59 = vadd.f32 %v133_v49, %v132_v31  ;;  %v261_v28 = vadd.f32 %v260_v12, %v259_v61  ;;  %v117_v31 = vrot.slane %v116_v15, 1 }
  0x99   :  { %2118 = vmatpush1.bf16.msra.mxu1 %v2117_v63  ;;  %1992 = vmatprep.subr.bf16.mxu0 %v1991_v2  ;;  %v109_v63 = vrot.slane %v108_v45, 2  ;;  %v127_v2 = vrot.slane %v126_v48, 2  ;;  %v123_v32 = vrot.slane %v122_v16, 1  ;;  %v154_v39 = vadd.f32 %v153_v21, %v152_v4 }
  0x9a   :  { %2120 = vmatprep.subr.bf16.mxu1 %v2119_v3  ;;  %v146_v3 = vadd.f32 %v145_v51, %v144_v35  ;;  %v266_v13 = vrot.slane %v265_v62, 2  ;;  %v135_v18 = vrot.slane %v134_v59, 1  ;;  %v225_v40 = vadd.f32 %v224_v22, %v223_v5 }
  0x9b   :  { %v110_v14 = vadd.f32 %v109_v63, %v108_v45  ;;  %v128_v17 = vadd.f32 %v127_v2, %v126_v48  ;;  %v250_v44 = vrot.slane %v249_v26, 1  ;;  %v256_v45 = vrot.slane %v255_v27, 1 }
  0x9c   :  { %1994 = vmatpush1.bf16.msra.mxu0 %v1993_v19  ;;  %v141_v19 = vrot.slane %v140_v60, 1  ;;  %v267_v29 = vadd.f32 %v266_v13, %v265_v62  ;;  %v136_v35 = vadd.f32 %v135_v18, %v134_v59  ;;  %v262_v46 = vrot.slane %v261_v28, 1 }
  0x9d   :  { %2122 = vmatpush1.bf16.msra.mxu1 %v2121_v20  ;;  %1996 = vmatprep.subr.bf16.mxu0 %v1995_v23  ;;  %v147_v20 = vrot.slane %v146_v3, 1  ;;  %v230_v23 = vrot.slane %v229_v6, 2  ;;  %v111_v30 = vrot.slane %v110_v14, 1  ;;  %v129_v34 = vrot.slane %v128_v17, 1 }
  0x9e   :  { %2124 = vmatprep.subr.bf16.mxu1 %v2123_v24  ;;  %v236_v24 = vrot.slane %v235_v7, 2  ;;  %v142_v36 = vadd.f32 %v141_v19, %v140_v60  ;;  %v268_v47 = vrot.slane %v267_v29, 1  ;;  %v2832_v48 = vsub.s32 %v167_v37, %v2826_v33 }
  0x9f   :  { %v148_v38 = vadd.f32 %v147_v20, %v146_v3  ;;  %v231_v41 = vadd.f32 %v230_v23, %v229_v6  ;;  %v112_v49 = vadd.f32 %v111_v30, %v110_v14  ;;  %v118_v50 = vadd.f32 %v117_v31, %v116_v15 }
  0xa0   :  { %v237_v42 = vadd.f32 %v236_v24, %v235_v7  ;;  %v124_v51 = vadd.f32 %v123_v32, %v122_v16  ;;  %v130_v52 = vadd.f32 %v129_v34, %v128_v17  ;;  %v180_v53 = vcombine.low %v136_v35, %v142_v36 }
  0xa1   :  { %v181_v54 = vcombine.low %v148_v38, %v154_v39  ;;  %v226_v55 = vrot.slane %v225_v40, 1  ;;  %v232_v56 = vrot.slane %v231_v41, 1  ;;  %v251_v61 = vadd.f32 %v250_v44, %v249_v26 }
  0xa2   :  { %v238_v57 = vrot.slane %v237_v42, 1  ;;  %v257_v62 = vadd.f32 %v256_v45, %v255_v27  ;;  %v263_v63 = vadd.f32 %v262_v46, %v261_v28  ;;  %v269_v0 = vadd.f32 %v268_v47, %v267_v29 }
  0xa3   :  { %v163_v1 = vcombine.low %v112_v49, %v118_v50  ;;  %v164_v2 = vcombine.low %v124_v51, %v130_v52  ;;  %v188_v11 = vrot.slane %v180_v53, %v2832_v48  ;;  %v195_v37 = vrot.slane %v181_v54, %v2832_v48  ;;  %v740_v52 = vld [vmem:[#allocation7 + $0xc00] sm:$0xff] }
  0xa4   :  { %v227_v59 = vadd.f32 %v226_v55, %v225_v40  ;;  %v233_v60 = vadd.f32 %v232_v56, %v231_v41  ;;  %v239_v3 = vadd.f32 %v238_v57, %v237_v42  ;;  %v245_v4 = vadd.f32 %v244_v58, %v243_v43  ;;  %v744_v54 = vld [vmem:[#allocation7 + $0xc20] sm:$0xff]  ;;  %v742_v55 = vld [vmem:[#allocation7 + $0xc10] sm:$0xff] }
  0xa5   :  { %v295_v5 = vcombine.low %v251_v61, %v257_v62  ;;  %v296_v6 = vcombine.low %v263_v63, %v269_v0  ;;  %v171_v7 = vrot.slane %v163_v1, %v2832_v48  ;;  %v178_v8 = vrot.slane %v164_v2, %v2832_v48  ;;  %v746_v56 = vld [vmem:[#allocation7 + $0xc30] sm:$0xff]  ;;  %v749_v61 = vld [vmem:[#allocation7 + $0xc48] sm:$0xff]  ;;  %v751_v63 = vld [vmem:[#allocation7 + $0xc58] sm:$0xff] }
  0xa6   :  { %v196_v9 = vcombine.low %v188_v11, %v195_v37  ;;  %v278_v10 = vcombine.low %v227_v59, %v233_v60  ;;  %v279_v12 = vcombine.low %v239_v3, %v245_v4  ;;  %v2697_v17 = vmov 269488144   ;;  %v753_v62 = vld [vmem:[#allocation7 + $0xc68] sm:$0xff]  ;;  %v755_v0 = vld [vmem:[#allocation7 + $0xc78] sm:$0xff]  ;;  %v748_v59 = vld [vmem:[#allocation7 + $0xc40] sm:$0xff] }
  0xa7   :  { %v303_v13 = vrot.slane %v295_v5, %v2832_v48  ;;  %v310_v14 = vrot.slane %v296_v6, %v2832_v48  ;;  %v179_v15 = vcombine.low %v171_v7, %v178_v8  ;;  %v333_v18 = vunpack.c.l.s4 %v2697_v17  ;;  %v752_v60 = vld [vmem:[#allocation7 + $0xc60] sm:$0xff]  ;;  %v750_v3 = vld [vmem:[#allocation7 + $0xc50] sm:$0xff]  ;;  %v757_v5 = vld [vmem:[#allocation7 + $0xc88] sm:$0xff] }
  0xa8   :  { %v201_v16 = vrot.slane %v196_v9, 7  ;;  %v286_v19 = vrot.slane %v278_v10, %v2832_v48  ;;  %v293_v20 = vrot.slane %v279_v12, %v2832_v48  ;;  %v1997_v2 = vpack.c.bf16 %v744_v54, %v740_v52  ;;  %v754_v4 = vld [vmem:[#allocation7 + $0xc70] sm:$0xff]  ;;  %v761_v9 = vld [vmem:[#allocation7 + $0xca8] sm:$0xff]  ;;  %v759_v10 = vld [vmem:[#allocation7 + $0xc98] sm:$0xff] }
  0xa9   :  { %v311_v21 = vcombine.low %v303_v13, %v310_v14  ;;  %v334_v23 = vunpack.c.0.s8 %v333_v18  ;;  %v2125_v11 = vpack.c.bf16 %v746_v56, %v742_v55  ;;  %v1999_v7 = vpack.c.bf16 %v753_v62, %v749_v61  ;;  %v763_v12 = vld [vmem:[#allocation7 + $0xcb8] sm:$0xff]  ;;  %v780_v55 = vld [vmem:[#allocation7 + $0xd40] sm:$0xff]  ;;  %v782_v61 = vld [vmem:[#allocation7 + $0xd50] sm:$0xff] }
  0xaa   :  { %v203_v22 = vsel %vm202_vm0, %v201_v16, %v179_v15  ;;  %v294_v24 = vcombine.low %v286_v19, %v293_v20  ;;  %v2127_v8 = vpack.c.bf16 %v755_v0, %v751_v63  ;;  %v2001_v13 = vpack.c.bf16 %v752_v60, %v748_v59  ;;  %v756_v15 = vld [vmem:[#allocation7 + $0xc80] sm:$0xff]  ;;  %v758_v19 = vld [vmem:[#allocation7 + $0xc90] sm:$0xff]  ;;  %v787_v52 = vld [vmem:[#allocation7 + $0xd78] sm:$0xff] }
  0xab   :  { %v314_v25 = vrot.slane %v311_v21, 7  ;;  %v205_v26 = vsel %vm204_vm1, %v201_v16, %v203_v22  ;;  %v337_v27 = vsub.s32 %v334_v23, %v2826_v33  ;;  %v2129_v14 = vpack.c.bf16 %v754_v4, %v750_v3  ;;  %v762_v20 = vld [vmem:[#allocation7 + $0xcb0] sm:$0xff]  ;;  %v765_v21 = vld [vmem:[#allocation7 + $0xcc8] sm:$0xff]  ;;  %v767_v23 = vld [vmem:[#allocation7 + $0xcd8] sm:$0xff] }
  0xac   :  { %v207_v28 = vsel %vm206_vm2, %v201_v16, %v205_v26  ;;  %v2003_v17 = vpack.c.bf16 %v761_v9, %v757_v5  ;;  %v2131_v18 = vpack.c.bf16 %v763_v12, %v759_v10  ;;  %v769_v22 = vld [vmem:[#allocation7 + $0xce8] sm:$0xff]  ;;  %v2133_v26 = vpack.c.bf16 %v762_v20, %v758_v19  ;;  %v784_v56 = vld [vmem:[#allocation7 + $0xd60] sm:$0xff]  ;;  %v786_v62 = vld [vmem:[#allocation7 + $0xd70] sm:$0xff] }
  0xad   :  { %v315_v29 = vsel %vm202_vm0, %v314_v25, %v294_v24  ;;  %v209_v31 = vsel %vm208_vm3, %v201_v16, %v207_v28  ;;  %v760_v16 = vld [vmem:[#allocation7 + $0xca0] sm:$0xff]  ;;  %v771_v24 = vld [vmem:[#allocation7 + $0xcf8] sm:$0xff]  ;;  %v789_v63 = vld [vmem:[#allocation7 + $0xd88] sm:$0xff]  ;;  %v2145_v59 = vpack.c.bf16 %v786_v62, %v782_v61 }
  0xae   :  { %v316_v32 = vsel %vm204_vm1, %v314_v25, %v315_v29  ;;  %v768_v28 = vld [vmem:[#allocation7 + $0xce0] sm:$0xff]  ;;  %v2007_v29 = vpack.c.bf16 %v769_v22, %v765_v21  ;;  %v793_v0 = vld [vmem:[#allocation7 + $0xda8] sm:$0xff]  ;;  %v799_v10 = vld [vmem:[#allocation7 + $0xdd8] sm:$0xff] }
  0xaf   :  { %v317_v35 = vsel %vm206_vm2, %v314_v25, %v316_v32  ;;  %v770_v32 = vld [vmem:[#allocation7 + $0xcf0] sm:$0xff]  ;;  %v788_v60 = vld [vmem:[#allocation7 + $0xd80] sm:$0xff]  ;;  %v2019_v4 = vpack.c.bf16 %v793_v0, %v789_v63  ;;  %v801_v9 = vld [vmem:[#allocation7 + $0xde8] sm:$0xff] }
  0xb0   :  { %v318_v40 = vsel %vm208_vm3, %v314_v25, %v317_v35  ;;  %v2005_v25 = vpack.c.bf16 %v760_v16, %v756_v15  ;;  %v777_v35 = vld [vmem:[#allocation7 + $0xd28] sm:$0xff]  ;;  %v792_v3 = vld [vmem:[#allocation7 + $0xda0] sm:$0xff]  ;;  %v803_v12 = vld [vmem:[#allocation7 + $0xdf8] sm:$0xff] }
  0xb1   :  { %v796_v15 = vld [vmem:[#allocation7 + $0xdc0] sm:$0xff]  ;;  %v798_v19 = vld [vmem:[#allocation7 + $0xdd0] sm:$0xff]  ;;  %v805_v21 = vld [vmem:[#allocation7 + $0xe08] sm:$0xff] }
  0xb2   :  { %v800_v16 = vld [vmem:[#allocation7 + $0xde0] sm:$0xff]  ;;  %v802_v20 = vld [vmem:[#allocation7 + $0xdf0] sm:$0xff]  ;;  %v809_v22 = vld [vmem:[#allocation7 + $0xe28] sm:$0xff] }
  0xb3   :  { %v822_v61 = vld [vmem:[#allocation7 + $0xe90] sm:$0xff]  ;;  %v829_v63 = vld [vmem:[#allocation7 + $0xec8] sm:$0xff] }
  0xb4   :  { %v826_v62 = vld [vmem:[#allocation7 + $0xeb0] sm:$0xff]  ;;  %v833_v0 = vld [vmem:[#allocation7 + $0xee8] sm:$0xff] }
  0xdc   :  { %v331_v30 = vpop.permute.xlu0 %330 }
  0xdd   :  { %v338_v34 = vrot.slane %v331_v30, %v337_v27  ;;  %v764_v27 = vld [vmem:[#allocation7 + $0xcc0] sm:$0xff]  ;;  %v2135_v30 = vpack.c.bf16 %v771_v24, %v767_v23  ;;  %v807_v23 = vld [vmem:[#allocation7 + $0xe18] sm:$0xff] }
  0xde   :  { %v811_v24 = vld [vmem:[#allocation7 + $0xe38] sm:$0xff] }
  0xdf   :  { %v2845_v36 = vmul.f32 %v338_v34, %v209_v31 }
  0xe1   :  { %v341_v38 = vmul.f32 2.0, %v2845_v36  ;;  %v344_v39 = vmul.f32 %v2845_v36, %v2845_v36 }
  0xe3   :  { %v342_v41 = vmul.f32 %v341_v38, %v209_v31  ;;  %v345_v43 = vmul.f32 8.0, %v344_v39  ;;  %v766_v31 = vld [vmem:[#allocation7 + $0xcd0] sm:$0xff]  ;;  %v775_v38 = vld [vmem:[#allocation7 + $0xd18] sm:$0xff] }
  0xe4   :  { %v779_v39 = vld [vmem:[#allocation7 + $0xd38] sm:$0xff] }
  0xe5   :  { %v343_v42 = vsub.f32 %v318_v40, %v342_v41  ;;  %v2009_v40 = vpack.c.bf16 %v768_v28, %v764_v27  ;;  %v2137_v41 = vpack.c.bf16 %v770_v32, %v766_v31  ;;  %v804_v27 = vld [vmem:[#allocation7 + $0xe00] sm:$0xff]  ;;  %v806_v31 = vld [vmem:[#allocation7 + $0xe10] sm:$0xff] }
  0xe6   :  { %v808_v28 = vld [vmem:[#allocation7 + $0xe20] sm:$0xff]  ;;  %v810_v32 = vld [vmem:[#allocation7 + $0xe30] sm:$0xff] }
  0xe7   :  { %v346_v44 = vadd.f32 %v345_v43, %v343_v42  ;;  %v772_v42 = vld [vmem:[#allocation7 + $0xd00] sm:$0xff] }
  0xe8   :  { %v776_v43 = vld [vmem:[#allocation7 + $0xd20] sm:$0xff] }
  0xe9   :  { %v347_v45 = vmax.f32 %v346_v44, 0.0 }
  0xeb   :  { %v348_v46 = vmul.f32 %v347_v45, %v338_v34  ;;  %v773_v34 = vld [vmem:[#allocation7 + $0xd08] sm:$0xff]  ;;  %v2139_v45 = vpack.c.bf16 %v779_v39, %v775_v38  ;;  %v815_v38 = vld [vmem:[#allocation7 + $0xe58] sm:$0xff] }
  0xec   :  { %v2011_v44 = vpack.c.bf16 %v777_v35, %v773_v34  ;;  %v813_v34 = vld [vmem:[#allocation7 + $0xe48] sm:$0xff]  ;;  %v819_v39 = vld [vmem:[#allocation7 + $0xe78] sm:$0xff] }
  0xed   :  { %2546 = vrsqrt.f32 %v348_v46  ;;  %vm351_vm4 = vcmp.eq.f32.partialorder %v348_v46, inf  ;;  %v354_v50 = vand.u32 2147483648, %v348_v46  ;;  %vm353_vm5 = vcmp.eq.f32.partialorder %v348_v46, 0.0  ;;  %v817_v35 = vld [vmem:[#allocation7 + $0xe68] sm:$0xff] }
  0xf7   :  { %v2547_v47 = vpop.eup %2546 }
  0xf8   :  { %v350_v49 = vmul.f32 %v2547_v47, %v348_v46  ;;  %v778_v47 = vld [vmem:[#allocation7 + $0xd30] sm:$0xff] }
  0xfa   :  { %v352_v51 = vsel %vm351_vm4, %v348_v46, %v350_v49  ;;  %v774_v46 = vld [vmem:[#allocation7 + $0xd10] sm:$0xff]  ;;  %v781_v49 = vld [vmem:[#allocation7 + $0xd48] sm:$0xff] }
  0xfb   :  { %v355_v53 = vsel %vm353_vm5, %v354_v50, %v352_v51  ;;  %v785_v50 = vld [vmem:[#allocation7 + $0xd68] sm:$0xff]  ;;  %v783_v51 = vld [vmem:[#allocation7 + $0xd58] sm:$0xff]  ;;  %v2141_v54 = vpack.c.bf16 %v778_v47, %v774_v46  ;;  %v814_v46 = vld [vmem:[#allocation7 + $0xe50] sm:$0xff] }
  0xfc   :  { %v869_v57 = vcombine.high %v355_v53, %v355_v53  ;;  %v876_v58 = vrot.slane %v355_v53, %v2832_v48  ;;  %v2013_v53 = vpack.c.bf16 %v776_v43, %v772_v42  ;;  %v812_v42 = vld [vmem:[#allocation7 + $0xe40] sm:$0xff]  ;;  %v818_v47 = vld [vmem:[#allocation7 + $0xe70] sm:$0xff] }
  0xfd   :  { %v816_v43 = vld [vmem:[#allocation7 + $0xe60] sm:$0xff] }
  0xfe   :  { %v884_v1 = vcombine.high %v876_v58, %v876_v58  ;;  %v2852_v37 = vrot.slane %v869_v57, %v2832_v48  ;;  %v2015_v57 = vpack.c.bf16 %v785_v50, %v781_v49  ;;  %v821_v49 = vld [vmem:[#allocation7 + $0xe88] sm:$0xff] }
  0xff   :  { %v825_v50 = vld [vmem:[#allocation7 + $0xea8] sm:$0xff] }
 0x100   :  { %954 = vmatprep.mubr.f32.mxu0 %v884_v1  ;;  %1096 = vmatprep.mubr.f32.mxu1 %v884_v1  ;;  %v885_v6 = vcombine.high %v2852_v37, %v2852_v37  ;;  %v791_v1 = vld [vmem:[#allocation7 + $0xd98] sm:$0xff] }
 0x101   :  { %955 = vmatmul.mubr.f32.vlgmr.msra.gmra.mrb[0].mxu0 %v876_v58  ;;  %1097 = vmatmul.mubr.f32.vlgmr.msra.gmra.mrb[0].mxu1 %v876_v58  ;;  %v2143_v58 = vpack.c.bf16 %v787_v52, %v783_v51  ;;  %v823_v51 = vld [vmem:[#allocation7 + $0xe98] sm:$0xff] }
 0x102   :  { %1998 = vmatpush1.bf16.msra.mxu0 %v1997_v2  ;;  %2126 = vmatpush1.bf16.msra.mxu1 %v2125_v11  ;;  %v795_v2 = vld [vmem:[#allocation7 + $0xdb8] sm:$0xff]  ;;  %v2017_v11 = vpack.c.bf16 %v784_v56, %v780_v55  ;;  %v820_v55 = vld [vmem:[#allocation7 + $0xe80] sm:$0xff] }
 0x103   :  { %1025 = vmatprep.mubr.f32.mxu0 %v885_v6  ;;  %1167 = vmatprep.mubr.f32.mxu1 %v885_v6  ;;  %v2147_v5 = vpack.c.bf16 %v795_v2, %v791_v1  ;;  %v790_v6 = vld [vmem:[#allocation7 + $0xd90] sm:$0xff]  ;;  %v827_v52 = vld [vmem:[#allocation7 + $0xeb8] sm:$0xff]  ;;  %v824_v56 = vld [vmem:[#allocation7 + $0xea0] sm:$0xff] }
 0x104   :  { %2000 = vmatprep.subr.bf16.mxu0 %v1999_v7  ;;  %2128 = vmatprep.subr.bf16.mxu1 %v2127_v8  ;;  %v794_v7 = vld [vmem:[#allocation7 + $0xdb0] sm:$0xff]  ;;  %v797_v8 = vld [vmem:[#allocation7 + $0xdc8] sm:$0xff]  ;;  %v831_v1 = vld [vmem:[#allocation7 + $0xed8] sm:$0xff] }
 0x105   :  { %v835_v2 = vld [vmem:[#allocation7 + $0xef8] sm:$0xff] }
 0x106   :  { %2002 = vmatpush1.bf16.msra.mxu0 %v2001_v13  ;;  %2130 = vmatpush1.bf16.msra.mxu1 %v2129_v14  ;;  %v2021_v13 = vpack.c.bf16 %v792_v3, %v788_v60  ;;  %v2149_v14 = vpack.c.bf16 %v794_v7, %v790_v6  ;;  %v828_v60 = vld [vmem:[#allocation7 + $0xec0] sm:$0xff]  ;;  %v830_v6 = vld [vmem:[#allocation7 + $0xed0] sm:$0xff] }
 0x107   :  { %2004 = vmatprep.subr.bf16.mxu0 %v2003_v17  ;;  %2132 = vmatprep.subr.bf16.mxu1 %v2131_v18  ;;  %v2023_v17 = vpack.c.bf16 %v801_v9, %v797_v8  ;;  %v2151_v18 = vpack.c.bf16 %v803_v12, %v799_v10  ;;  %v832_v3 = vld [vmem:[#allocation7 + $0xee0] sm:$0xff]  ;;  %v834_v7 = vld [vmem:[#allocation7 + $0xef0] sm:$0xff]  ;;  %v837_v8 = vld [vmem:[#allocation7 + $0xf08] sm:$0xff] }
 0x108   :  { %v841_v9 = vld [vmem:[#allocation7 + $0xf28] sm:$0xff]  ;;  %v839_v10 = vld [vmem:[#allocation7 + $0xf18] sm:$0xff] }
 0x109   :  { %v843_v12 = vld [vmem:[#allocation7 + $0xf38] sm:$0xff] }
 0x10a   :  { %2006 = vmatpush1.bf16.msra.mxu0 %v2005_v25  ;;  %2134 = vmatpush1.bf16.msra.mxu1 %v2133_v26  ;;  %v2025_v25 = vpack.c.bf16 %v800_v16, %v796_v15  ;;  %v2153_v26 = vpack.c.bf16 %v802_v20, %v798_v19  ;;  %v836_v15 = vld [vmem:[#allocation7 + $0xf00] sm:$0xff]  ;;  %v838_v19 = vld [vmem:[#allocation7 + $0xf10] sm:$0xff] }
 0x10b   :  { %2008 = vmatprep.subr.bf16.mxu0 %v2007_v29  ;;  %2136 = vmatprep.subr.bf16.mxu1 %v2135_v30  ;;  %v2027_v29 = vpack.c.bf16 %v809_v22, %v805_v21  ;;  %v2155_v30 = vpack.c.bf16 %v811_v24, %v807_v23  ;;  %v840_v16 = vld [vmem:[#allocation7 + $0xf20] sm:$0xff]  ;;  %v842_v20 = vld [vmem:[#allocation7 + $0xf30] sm:$0xff]  ;;  %v845_v21 = vld [vmem:[#allocation7 + $0xf48] sm:$0xff] }
 0x10c   :  { %v849_v22 = vld [vmem:[#allocation7 + $0xf68] sm:$0xff]  ;;  %v847_v23 = vld [vmem:[#allocation7 + $0xf58] sm:$0xff] }
 0x10d   :  { %v851_v24 = vld [vmem:[#allocation7 + $0xf78] sm:$0xff] }
 0x10e   :  { %2010 = vmatpush1.bf16.msra.mxu0 %v2009_v40  ;;  %2138 = vmatpush1.bf16.msra.mxu1 %v2137_v41  ;;  %v2029_v40 = vpack.c.bf16 %v808_v28, %v804_v27  ;;  %v2157_v41 = vpack.c.bf16 %v810_v32, %v806_v31  ;;  %v844_v27 = vld [vmem:[#allocation7 + $0xf40] sm:$0xff]  ;;  %v846_v31 = vld [vmem:[#allocation7 + $0xf50] sm:$0xff] }
 0x10f   :  { %2012 = vmatprep.subr.bf16.mxu0 %v2011_v44  ;;  %2140 = vmatprep.subr.bf16.mxu1 %v2139_v45  ;;  %v2031_v44 = vpack.c.bf16 %v817_v35, %v813_v34  ;;  %v2159_v45 = vpack.c.bf16 %v819_v39, %v815_v38  ;;  %v848_v28 = vld [vmem:[#allocation7 + $0xf60] sm:$0xff]  ;;  %v850_v32 = vld [vmem:[#allocation7 + $0xf70] sm:$0xff]  ;;  %v853_v34 = vld [vmem:[#allocation7 + $0xf88] sm:$0xff] }
 0x110   :  { %v857_v35 = vld [vmem:[#allocation7 + $0xfa8] sm:$0xff]  ;;  %v855_v38 = vld [vmem:[#allocation7 + $0xf98] sm:$0xff] }
 0x111   :  { %v859_v39 = vld [vmem:[#allocation7 + $0xfb8] sm:$0xff] }
 0x112   :  { %2014 = vmatpush1.bf16.msra.mxu0 %v2013_v53  ;;  %2142 = vmatpush1.bf16.msra.mxu1 %v2141_v54  ;;  %v2033_v53 = vpack.c.bf16 %v816_v43, %v812_v42  ;;  %v2161_v54 = vpack.c.bf16 %v818_v47, %v814_v46  ;;  %v852_v42 = vld [vmem:[#allocation7 + $0xf80] sm:$0xff]  ;;  %v854_v46 = vld [vmem:[#allocation7 + $0xf90] sm:$0xff] }
 0x113   :  { %2016 = vmatprep.subr.bf16.mxu0 %v2015_v57  ;;  %2144 = vmatprep.subr.bf16.mxu1 %v2143_v58  ;;  %v2035_v57 = vpack.c.bf16 %v825_v50, %v821_v49  ;;  %v2163_v58 = vpack.c.bf16 %v827_v52, %v823_v51  ;;  %v856_v43 = vld [vmem:[#allocation7 + $0xfa0] sm:$0xff]  ;;  %v858_v47 = vld [vmem:[#allocation7 + $0xfb0] sm:$0xff]  ;;  %v861_v49 = vld [vmem:[#allocation7 + $0xfc8] sm:$0xff] }
 0x114   :  { %v865_v50 = vld [vmem:[#allocation7 + $0xfe8] sm:$0xff]  ;;  %v863_v51 = vld [vmem:[#allocation7 + $0xfd8] sm:$0xff] }
 0x115   :  { %v867_v52 = vld [vmem:[#allocation7 + $0xff8] sm:$0xff] }
 0x116   :  { %2018 = vmatpush1.bf16.msra.mxu0 %v2017_v11  ;;  %2146 = vmatpush1.bf16.msra.mxu1 %v2145_v59  ;;  %v2037_v11 = vpack.c.bf16 %v824_v56, %v820_v55  ;;  %v2165_v59 = vpack.c.bf16 %v826_v62, %v822_v61  ;;  %v860_v55 = vld [vmem:[#allocation7 + $0xfc0] sm:$0xff]  ;;  %v862_v61 = vld [vmem:[#allocation7 + $0xfd0] sm:$0xff] }
 0x117   :  { %2020 = vmatprep.subr.bf16.mxu0 %v2019_v4  ;;  %2148 = vmatprep.subr.bf16.mxu1 %v2147_v5  ;;  %v2039_v4 = vpack.c.bf16 %v833_v0, %v829_v63  ;;  %v2167_v5 = vpack.c.bf16 %v835_v2, %v831_v1  ;;  %v864_v56 = vld [vmem:[#allocation7 + $0xfe0] sm:$0xff]  ;;  %v866_v62 = vld [vmem:[#allocation7 + $0xff0] sm:$0xff]  ;;  %v357_v63 = vld [vmem:[#allocation7 + $0x8] sm:$0xff] }
 0x118   :  { %v361_v0 = vld [vmem:[#allocation7 + $0x28] sm:$0xff]  ;;  %v359_v1 = vld [vmem:[#allocation7 + $0x18] sm:$0xff] }
 0x119   :  { %v363_v2 = vld [vmem:[#allocation7 + $0x38] sm:$0xff] }
 0x11a   :  { %2022 = vmatpush1.bf16.msra.mxu0 %v2021_v13  ;;  %2150 = vmatpush1.bf16.msra.mxu1 %v2149_v14  ;;  %v2041_v13 = vpack.c.bf16 %v832_v3, %v828_v60  ;;  %v2169_v14 = vpack.c.bf16 %v834_v7, %v830_v6  ;;  %v2187_v60 = vpack.c.bf16 %v361_v0, %v357_v63  ;;  %v358_v7 = vld [vmem:[#allocation7 + $0x10] sm:$0xff]  ;;  %v397_v0 = vld [vmem:[#allocation7 + $0x148] sm:$0xff] }
 0x11b   :  { %2024 = vmatprep.subr.bf16.mxu0 %v2023_v17  ;;  %2152 = vmatprep.subr.bf16.mxu1 %v2151_v18  ;;  %v2043_v17 = vpack.c.bf16 %v841_v9, %v837_v8  ;;  %v2171_v18 = vpack.c.bf16 %v843_v12, %v839_v10  ;;  %v2315_v3 = vpack.c.bf16 %v363_v2, %v359_v1  ;;  %v362_v8 = vld [vmem:[#allocation7 + $0x30] sm:$0xff]  ;;  %v365_v9 = vld [vmem:[#allocation7 + $0x48] sm:$0xff]  ;;  %v367_v12 = vld [vmem:[#allocation7 + $0x58] sm:$0xff] }
 0x11c   :  { %v2858_v6 = vrot.slane %v2845_v36, %v2832_v48  ;;  %v369_v10 = vld [vmem:[#allocation7 + $0x68] sm:$0xff]  ;;  %v394_v63 = vld [vmem:[#allocation7 + $0x130] sm:$0xff]  ;;  %v399_v2 = vld [vmem:[#allocation7 + $0x158] sm:$0xff] }
 0x11d   :  { %v401_v1 = vld [vmem:[#allocation7 + $0x168] sm:$0xff] }
 0x11e   :  { %2026 = vmatpush1.bf16.msra.mxu0 %v2025_v25  ;;  %2154 = vmatpush1.bf16.msra.mxu1 %v2153_v26  ;;  %v2045_v25 = vpack.c.bf16 %v840_v16, %v836_v15  ;;  %v2173_v26 = vpack.c.bf16 %v842_v20, %v838_v19  ;;  %v2317_v15 = vpack.c.bf16 %v362_v8, %v358_v7  ;;  %v364_v16 = vld [vmem:[#allocation7 + $0x40] sm:$0xff]  ;;  %v398_v7 = vld [vmem:[#allocation7 + $0x150] sm:$0xff] }
 0x11f   :  { %2028 = vmatprep.subr.bf16.mxu0 %v2027_v29  ;;  %2156 = vmatprep.subr.bf16.mxu1 %v2155_v30  ;;  %v2047_v29 = vpack.c.bf16 %v849_v22, %v845_v21  ;;  %v2175_v30 = vpack.c.bf16 %v851_v24, %v847_v23  ;;  %v1190_v19 = vcombine.high %v2858_v6, %v2858_v6  ;;  %v370_v22 = vld [vmem:[#allocation7 + $0x70] sm:$0xff]  ;;  %v373_v23 = vld [vmem:[#allocation7 + $0x88] sm:$0xff] }
 0x120   :  { %v2191_v20 = vpack.c.bf16 %v369_v10, %v365_v9  ;;  %v377_v24 = vld [vmem:[#allocation7 + $0xa8] sm:$0xff]  ;;  %v402_v9 = vld [vmem:[#allocation7 + $0x170] sm:$0xff] }
 0x121   :  { %v405_v10 = vld [vmem:[#allocation7 + $0x188] sm:$0xff] }
 0x122   :  { %2030 = vmatpush1.bf16.msra.mxu0 %v2029_v40  ;;  %2158 = vmatpush1.bf16.msra.mxu1 %v2157_v41  ;;  %v2049_v40 = vpack.c.bf16 %v848_v28, %v844_v27  ;;  %v2177_v41 = vpack.c.bf16 %v850_v32, %v846_v31  ;;  %v376_v31 = vld [vmem:[#allocation7 + $0xa0] sm:$0xff]  ;;  %v374_v32 = vld [vmem:[#allocation7 + $0x90] sm:$0xff] }
 0x123   :  { %2032 = vmatprep.subr.bf16.mxu0 %v2031_v44  ;;  %2160 = vmatprep.subr.bf16.mxu1 %v2159_v45  ;;  %v2051_v44 = vpack.c.bf16 %v857_v35, %v853_v34  ;;  %v2179_v45 = vpack.c.bf16 %v859_v39, %v855_v38  ;;  %v378_v35 = vld [vmem:[#allocation7 + $0xb0] sm:$0xff]  ;;  %v381_v38 = vld [vmem:[#allocation7 + $0xc8] sm:$0xff] }
 0x124   :  { %v385_v39 = vld [vmem:[#allocation7 + $0xe8] sm:$0xff] }
 0x126   :  { %2034 = vmatpush1.bf16.msra.mxu0 %v2033_v53  ;;  %2162 = vmatpush1.bf16.msra.mxu1 %v2161_v54  ;;  %v2053_v53 = vpack.c.bf16 %v856_v43, %v852_v42  ;;  %v2181_v54 = vpack.c.bf16 %v858_v47, %v854_v46  ;;  %v2325_v42 = vpack.c.bf16 %v378_v35, %v374_v32  ;;  %v382_v46 = vld [vmem:[#allocation7 + $0xd0] sm:$0xff] }
 0x127   :  { %2036 = vmatprep.subr.bf16.mxu0 %v2035_v57  ;;  %2164 = vmatprep.subr.bf16.mxu1 %v2163_v58  ;;  %v2055_v57 = vpack.c.bf16 %v865_v50, %v861_v49  ;;  %v2183_v58 = vpack.c.bf16 %v867_v52, %v863_v51  ;;  %v2199_v43 = vpack.c.bf16 %v385_v39, %v381_v38  ;;  %v386_v49 = vld [vmem:[#allocation7 + $0xf0] sm:$0xff]  ;;  %v389_v50 = vld [vmem:[#allocation7 + $0x108] sm:$0xff]  ;;  %v391_v52 = vld [vmem:[#allocation7 + $0x118] sm:$0xff] }
 0x128   :  { %v393_v51 = vld [vmem:[#allocation7 + $0x128] sm:$0xff]  ;;  %v414_v32 = vld [vmem:[#allocation7 + $0x1d0] sm:$0xff] }
 0x129   :  { %v418_v35 = vld [vmem:[#allocation7 + $0x1f0] sm:$0xff]  ;;  %v421_v38 = vld [vmem:[#allocation7 + $0x208] sm:$0xff] }
 0x12a   :  { %2038 = vmatpush1.bf16.msra.mxu0 %v2037_v11  ;;  %2166 = vmatpush1.bf16.msra.mxu1 %v2165_v59  ;;  %v2057_v11 = vpack.c.bf16 %v864_v56, %v860_v55  ;;  %v2185_v59 = vpack.c.bf16 %v866_v62, %v862_v61  ;;  %v2329_v55 = vpack.c.bf16 %v386_v49, %v382_v46  ;;  %v390_v61 = vld [vmem:[#allocation7 + $0x110] sm:$0xff]  ;;  %v425_v39 = vld [vmem:[#allocation7 + $0x228] sm:$0xff] }
 0x12b   :  { %2040 = vmatprep.subr.bf16.mxu0 %v2039_v4  ;;  %2168 = vmatprep.subr.bf16.mxu1 %v2167_v5  ;;  %v356_v4 = vld [vmem:[#allocation7] sm:$0xff]  ;;  %v2203_v56 = vpack.c.bf16 %v393_v51, %v389_v50  ;;  %v422_v46 = vld [vmem:[#allocation7 + $0x210] sm:$0xff]  ;;  %v429_v50 = vld [vmem:[#allocation7 + $0x248] sm:$0xff] }
 0x12c   :  { %v360_v5 = vld [vmem:[#allocation7 + $0x20] sm:$0xff]  ;;  %v426_v49 = vld [vmem:[#allocation7 + $0x230] sm:$0xff]  ;;  %v433_v51 = vld [vmem:[#allocation7 + $0x268] sm:$0xff] }
 0x12e   :  { %2042 = vmatpush1.bf16.msra.mxu0 %v2041_v13  ;;  %2170 = vmatpush1.bf16.msra.mxu1 %v2169_v14  ;;  %v371_v13 = vld [vmem:[#allocation7 + $0x78] sm:$0xff]  ;;  %v2189_v14 = vpack.c.bf16 %v360_v5, %v356_v4  ;;  %v396_v4 = vld [vmem:[#allocation7 + $0x140] sm:$0xff] }
 0x12f   :  { %2044 = vmatprep.subr.bf16.mxu0 %v2043_v17  ;;  %2172 = vmatprep.subr.bf16.mxu1 %v2171_v18  ;;  %v368_v17 = vld [vmem:[#allocation7 + $0x60] sm:$0xff]  ;;  %v366_v18 = vld [vmem:[#allocation7 + $0x50] sm:$0xff]  ;;  %v2319_v21 = vpack.c.bf16 %v371_v13, %v367_v12  ;;  %v409_v12 = vld [vmem:[#allocation7 + $0x1a8] sm:$0xff] }
 0x130   :  { %v2193_v27 = vpack.c.bf16 %v368_v17, %v364_v16  ;;  %v2321_v28 = vpack.c.bf16 %v370_v22, %v366_v18  ;;  %v400_v5 = vld [vmem:[#allocation7 + $0x160] sm:$0xff]  ;;  %v407_v13 = vld [vmem:[#allocation7 + $0x198] sm:$0xff]  ;;  %v2337_v16 = vpack.c.bf16 %v402_v9, %v398_v7  ;;  %v2211_v17 = vpack.c.bf16 %v409_v12, %v405_v10  ;;  %v410_v22 = vld [vmem:[#allocation7 + $0x1b0] sm:$0xff] }
 0x131   :  { %v404_v18 = vld [vmem:[#allocation7 + $0x180] sm:$0xff]  ;;  %v438_v7 = vld [vmem:[#allocation7 + $0x290] sm:$0xff]  ;;  %v445_v10 = vld [vmem:[#allocation7 + $0x2c8] sm:$0xff] }
 0x132   :  { %2046 = vmatpush1.bf16.msra.mxu0 %v2045_v25  ;;  %2174 = vmatpush1.bf16.msra.mxu1 %v2173_v26  ;;  %v375_v25 = vld [vmem:[#allocation7 + $0x98] sm:$0xff]  ;;  %v442_v9 = vld [vmem:[#allocation7 + $0x2b0] sm:$0xff]  ;;  %v449_v12 = vld [vmem:[#allocation7 + $0x2e8] sm:$0xff] }
 0x133   :  { %2048 = vmatprep.subr.bf16.mxu0 %v2047_v29  ;;  %2176 = vmatprep.subr.bf16.mxu1 %v2175_v30  ;;  %v379_v26 = vld [vmem:[#allocation7 + $0xb8] sm:$0xff]  ;;  %v2195_v29 = vpack.c.bf16 %v377_v24, %v373_v23  ;;  %v372_v30 = vld [vmem:[#allocation7 + $0x80] sm:$0xff]  ;;  %v413_v23 = vld [vmem:[#allocation7 + $0x1c8] sm:$0xff] }
 0x134   :  { %v2323_v34 = vpack.c.bf16 %v379_v26, %v375_v25  ;;  %v417_v24 = vld [vmem:[#allocation7 + $0x1e8] sm:$0xff]  ;;  %v415_v25 = vld [vmem:[#allocation7 + $0x1d8] sm:$0xff] }
 0x135   :  { %v419_v26 = vld [vmem:[#allocation7 + $0x1f8] sm:$0xff] }
 0x136   :  { %2050 = vmatpush1.bf16.msra.mxu0 %v2049_v40  ;;  %2178 = vmatpush1.bf16.msra.mxu1 %v2177_v41  ;;  %v383_v40 = vld [vmem:[#allocation7 + $0xd8] sm:$0xff]  ;;  %v2197_v41 = vpack.c.bf16 %v376_v31, %v372_v30  ;;  %v412_v30 = vld [vmem:[#allocation7 + $0x1c0] sm:$0xff] }
 0x137   :  { %2052 = vmatprep.subr.bf16.mxu0 %v2051_v44  ;;  %2180 = vmatprep.subr.bf16.mxu1 %v2179_v45  ;;  %v380_v44 = vld [vmem:[#allocation7 + $0xc0] sm:$0xff] }
 0x138   :  { %v384_v45 = vld [vmem:[#allocation7 + $0xe0] sm:$0xff] }
 0x139   :  { %v416_v31 = vld [vmem:[#allocation7 + $0x1e0] sm:$0xff] }
 0x13a   :  { %2054 = vmatpush1.bf16.msra.mxu0 %v2053_v53  ;;  %2182 = vmatpush1.bf16.msra.mxu1 %v2181_v54  ;;  %v395_v53 = vld [vmem:[#allocation7 + $0x138] sm:$0xff]  ;;  %v2201_v54 = vpack.c.bf16 %v384_v45, %v380_v44  ;;  %v420_v44 = vld [vmem:[#allocation7 + $0x200] sm:$0xff] }
 0x13b   :  { %2056 = vmatprep.subr.bf16.mxu0 %v2055_v57  ;;  %2184 = vmatprep.subr.bf16.mxu1 %v2183_v58  ;;  %v388_v57 = vld [vmem:[#allocation7 + $0x100] sm:$0xff]  ;;  %v2331_v62 = vpack.c.bf16 %v395_v53, %v391_v52  ;;  %v431_v52 = vld [vmem:[#allocation7 + $0x258] sm:$0xff] }
 0x13c   :  { %v392_v58 = vld [vmem:[#allocation7 + $0x120] sm:$0xff]  ;;  %v435_v53 = vld [vmem:[#allocation7 + $0x278] sm:$0xff] }
 0x13d   :  { %v424_v45 = vld [vmem:[#allocation7 + $0x220] sm:$0xff] }
 0x13e   :  { %2058 = vmatpush1.bf16.msra.mxu0 %v2057_v11  ;;  %2186 = vmatpush1.bf16.msra.mxu1 %v2185_v59  ;;  %v403_v11 = vld [vmem:[#allocation7 + $0x178] sm:$0xff]  ;;  %v2205_v59 = vpack.c.bf16 %v392_v58, %v388_v57  ;;  %v428_v57 = vld [vmem:[#allocation7 + $0x240] sm:$0xff] }
 0x13f   :  { %2188 = vmatprep.subr.bf16.mxu0 %v2187_v60  ;;  %2316 = vmatprep.subr.bf16.mxu1 %v2315_v3  ;;  %v2333_v60 = vpack.c.bf16 %v394_v63, %v390_v61  ;;  %v2207_v3 = vpack.c.bf16 %v401_v1, %v397_v0  ;;  %v2335_v8 = vpack.c.bf16 %v403_v11, %v399_v2  ;;  %v432_v58 = vld [vmem:[#allocation7 + $0x260] sm:$0xff]  ;;  %v430_v61 = vld [vmem:[#allocation7 + $0x250] sm:$0xff]  ;;  %v437_v0 = vld [vmem:[#allocation7 + $0x288] sm:$0xff] }
 0x140   :  { %v434_v63 = vld [vmem:[#allocation7 + $0x270] sm:$0xff]  ;;  %v441_v1 = vld [vmem:[#allocation7 + $0x2a8] sm:$0xff]  ;;  %v439_v2 = vld [vmem:[#allocation7 + $0x298] sm:$0xff] }
 0x141   :  { %1026 = vmatmul.mubr.f32.vlgmr.msra.gmra.mrb[0].mxu0 %v2852_v37  ;;  %1168 = vmatmul.mubr.f32.vlgmr.msra.gmra.mrb[0].mxu1 %v2852_v37  ;;  %v387_v37 = vld [vmem:[#allocation7 + $0xf8] sm:$0xff] }
 0x142   :  { %2190 = vmatpush1.bf16.msra.mxu0 %v2189_v14  ;;  %1260 = vmatprep.mubr.f32.mxu0 %v1190_v19  ;;  %v2327_v47 = vpack.c.bf16 %v387_v37, %v383_v40  ;;  %v411_v14 = vld [vmem:[#allocation7 + $0x1b8] sm:$0xff] }
 0x143   :  { %2318 = vmatpush1.bf16.msra.mxu1 %v2317_v15  ;;  %1402 = vmatprep.mubr.f32.mxu1 %v1190_v19  ;;  %v2209_v15 = vpack.c.bf16 %v400_v5, %v396_v4  ;;  %v408_v19 = vld [vmem:[#allocation7 + $0x1a0] sm:$0xff]  ;;  %v423_v40 = vld [vmem:[#allocation7 + $0x218] sm:$0xff] }
 0x144   :  { %2192 = vmatprep.subr.bf16.mxu0 %v2191_v20  ;;  %2320 = vmatprep.subr.bf16.mxu1 %v2319_v21  ;;  %v406_v20 = vld [vmem:[#allocation7 + $0x190] sm:$0xff]  ;;  %v2339_v21 = vpack.c.bf16 %v411_v14, %v407_v13  ;;  %v427_v37 = vld [vmem:[#allocation7 + $0x238] sm:$0xff]  ;;  %v436_v4 = vld [vmem:[#allocation7 + $0x280] sm:$0xff] }
 0x145   :  { %v443_v11 = vld [vmem:[#allocation7 + $0x2b8] sm:$0xff]  ;;  %v440_v5 = vld [vmem:[#allocation7 + $0x2a0] sm:$0xff] }
 0x146   :  { %2194 = vmatpush1.bf16.msra.mxu0 %v2193_v27  ;;  %v2213_v27 = vpack.c.bf16 %v408_v19, %v404_v18  ;;  %v447_v13 = vld [vmem:[#allocation7 + $0x2d8] sm:$0xff]  ;;  %v444_v18 = vld [vmem:[#allocation7 + $0x2c0] sm:$0xff] }
 0x147   :  { %2322 = vmatpush1.bf16.msra.mxu1 %v2321_v28  ;;  %2196 = vmatprep.subr.bf16.mxu0 %v2195_v29  ;;  %v2341_v28 = vpack.c.bf16 %v410_v22, %v406_v20  ;;  %v2215_v29 = vpack.c.bf16 %v417_v24, %v413_v23  ;;  %v451_v14 = vld [vmem:[#allocation7 + $0x2f8] sm:$0xff]  ;;  %v448_v19 = vld [vmem:[#allocation7 + $0x2e0] sm:$0xff]  ;;  %v446_v20 = vld [vmem:[#allocation7 + $0x2d0] sm:$0xff] }
 0x148   :  { %2324 = vmatprep.subr.bf16.mxu1 %v2323_v34  ;;  %v2343_v34 = vpack.c.bf16 %v419_v26, %v415_v25  ;;  %v450_v22 = vld [vmem:[#allocation7 + $0x2f0] sm:$0xff]  ;;  %v453_v23 = vld [vmem:[#allocation7 + $0x308] sm:$0xff]  ;;  %v455_v25 = vld [vmem:[#allocation7 + $0x318] sm:$0xff] }
 0x149   :  { %v457_v24 = vld [vmem:[#allocation7 + $0x328] sm:$0xff]  ;;  %v459_v26 = vld [vmem:[#allocation7 + $0x338] sm:$0xff] }
 0x14a   :  { %2198 = vmatpush1.bf16.msra.mxu0 %v2197_v41  ;;  %v2217_v41 = vpack.c.bf16 %v416_v31, %v412_v30  ;;  %v452_v30 = vld [vmem:[#allocation7 + $0x300] sm:$0xff] }
 0x14b   :  { %2326 = vmatpush1.bf16.msra.mxu1 %v2325_v42  ;;  %2200 = vmatprep.subr.bf16.mxu0 %v2199_v43  ;;  %v2345_v42 = vpack.c.bf16 %v418_v35, %v414_v32  ;;  %v2219_v43 = vpack.c.bf16 %v425_v39, %v421_v38  ;;  %v456_v31 = vld [vmem:[#allocation7 + $0x320] sm:$0xff]  ;;  %v454_v32 = vld [vmem:[#allocation7 + $0x310] sm:$0xff]  ;;  %v461_v38 = vld [vmem:[#allocation7 + $0x348] sm:$0xff] }
 0x14c   :  { %2328 = vmatprep.subr.bf16.mxu1 %v2327_v47  ;;  %v2347_v47 = vpack.c.bf16 %v427_v37, %v423_v40  ;;  %v458_v35 = vld [vmem:[#allocation7 + $0x330] sm:$0xff]  ;;  %v465_v39 = vld [vmem:[#allocation7 + $0x368] sm:$0xff]  ;;  %v463_v40 = vld [vmem:[#allocation7 + $0x358] sm:$0xff] }
 0x14d   :  { %v467_v37 = vld [vmem:[#allocation7 + $0x378] sm:$0xff] }
 0x14e   :  { %2202 = vmatpush1.bf16.msra.mxu0 %v2201_v54  ;;  %v2221_v54 = vpack.c.bf16 %v424_v45, %v420_v44  ;;  %v460_v44 = vld [vmem:[#allocation7 + $0x340] sm:$0xff] }
 0x14f   :  { %2330 = vmatpush1.bf16.msra.mxu1 %v2329_v55  ;;  %2204 = vmatprep.subr.bf16.mxu0 %v2203_v56  ;;  %v2349_v55 = vpack.c.bf16 %v426_v49, %v422_v46  ;;  %v2223_v56 = vpack.c.bf16 %v433_v51, %v429_v50  ;;  %v464_v45 = vld [vmem:[#allocation7 + $0x360] sm:$0xff]  ;;  %v462_v46 = vld [vmem:[#allocation7 + $0x350] sm:$0xff]  ;;  %v469_v50 = vld [vmem:[#allocation7 + $0x388] sm:$0xff] }
 0x150   :  { %2332 = vmatprep.subr.bf16.mxu1 %v2331_v62  ;;  %v2351_v62 = vpack.c.bf16 %v435_v53, %v431_v52  ;;  %v466_v49 = vld [vmem:[#allocation7 + $0x370] sm:$0xff]  ;;  %v473_v51 = vld [vmem:[#allocation7 + $0x3a8] sm:$0xff]  ;;  %v471_v52 = vld [vmem:[#allocation7 + $0x398] sm:$0xff] }
 0x151   :  { %v475_v53 = vld [vmem:[#allocation7 + $0x3b8] sm:$0xff] }
 0x152   :  { %2206 = vmatpush1.bf16.msra.mxu0 %v2205_v59  ;;  %v2225_v59 = vpack.c.bf16 %v432_v58, %v428_v57  ;;  %v468_v57 = vld [vmem:[#allocation7 + $0x380] sm:$0xff] }
 0x153   :  { %2334 = vmatpush1.bf16.msra.mxu1 %v2333_v60  ;;  %2208 = vmatprep.subr.bf16.mxu0 %v2207_v3  ;;  %v2353_v60 = vpack.c.bf16 %v434_v63, %v430_v61  ;;  %v2227_v3 = vpack.c.bf16 %v441_v1, %v437_v0  ;;  %v472_v58 = vld [vmem:[#allocation7 + $0x3a0] sm:$0xff]  ;;  %v470_v61 = vld [vmem:[#allocation7 + $0x390] sm:$0xff]  ;;  %v477_v0 = vld [vmem:[#allocation7 + $0x3c8] sm:$0xff] }
 0x154   :  { %2336 = vmatprep.subr.bf16.mxu1 %v2335_v8  ;;  %v2355_v8 = vpack.c.bf16 %v443_v11, %v439_v2  ;;  %v474_v63 = vld [vmem:[#allocation7 + $0x3b0] sm:$0xff]  ;;  %v481_v1 = vld [vmem:[#allocation7 + $0x3e8] sm:$0xff]  ;;  %v479_v2 = vld [vmem:[#allocation7 + $0x3d8] sm:$0xff] }
 0x155   :  { %v483_v11 = vld [vmem:[#allocation7 + $0x3f8] sm:$0xff] }
 0x156   :  { %2210 = vmatpush1.bf16.msra.mxu0 %v2209_v15  ;;  %v2229_v15 = vpack.c.bf16 %v440_v5, %v436_v4  ;;  %v476_v4 = vld [vmem:[#allocation7 + $0x3c0] sm:$0xff] }
 0x157   :  { %2338 = vmatpush1.bf16.msra.mxu1 %v2337_v16  ;;  %2212 = vmatprep.subr.bf16.mxu0 %v2211_v17  ;;  %v2357_v16 = vpack.c.bf16 %v442_v9, %v438_v7  ;;  %v2231_v17 = vpack.c.bf16 %v449_v12, %v445_v10  ;;  %v480_v5 = vld [vmem:[#allocation7 + $0x3e0] sm:$0xff]  ;;  %v478_v7 = vld [vmem:[#allocation7 + $0x3d0] sm:$0xff]  ;;  %v485_v10 = vld [vmem:[#allocation7 + $0x408] sm:$0xff] }
 0x158   :  { %2340 = vmatprep.subr.bf16.mxu1 %v2339_v21  ;;  %v2359_v21 = vpack.c.bf16 %v451_v14, %v447_v13  ;;  %v482_v9 = vld [vmem:[#allocation7 + $0x3f0] sm:$0xff]  ;;  %v489_v12 = vld [vmem:[#allocation7 + $0x428] sm:$0xff]  ;;  %v487_v13 = vld [vmem:[#allocation7 + $0x418] sm:$0xff] }
 0x159   :  { %v491_v14 = vld [vmem:[#allocation7 + $0x438] sm:$0xff] }
 0x15a   :  { %2214 = vmatpush1.bf16.msra.mxu0 %v2213_v27  ;;  %v2233_v27 = vpack.c.bf16 %v448_v19, %v444_v18  ;;  %v2251_v18 = vpack.c.bf16 %v489_v12, %v485_v10  ;;  %v484_v19 = vld [vmem:[#allocation7 + $0x400] sm:$0xff]  ;;  %v525_v10 = vld [vmem:[#allocation7 + $0x548] sm:$0xff] }
 0x15b   :  { %2342 = vmatpush1.bf16.msra.mxu1 %v2341_v28  ;;  %2216 = vmatprep.subr.bf16.mxu0 %v2215_v29  ;;  %v2361_v28 = vpack.c.bf16 %v450_v22, %v446_v20  ;;  %v2235_v29 = vpack.c.bf16 %v457_v24, %v453_v23  ;;  %v488_v20 = vld [vmem:[#allocation7 + $0x420] sm:$0xff]  ;;  %v486_v22 = vld [vmem:[#allocation7 + $0x410] sm:$0xff]  ;;  %v529_v12 = vld [vmem:[#allocation7 + $0x568] sm:$0xff] }
 0x15c   :  { %2344 = vmatprep.subr.bf16.mxu1 %v2343_v34  ;;  %v2363_v34 = vpack.c.bf16 %v459_v26, %v455_v25  ;;  %v490_v23 = vld [vmem:[#allocation7 + $0x430] sm:$0xff]  ;;  %v493_v25 = vld [vmem:[#allocation7 + $0x448] sm:$0xff] }
 0x15d   :  { %v497_v26 = vld [vmem:[#allocation7 + $0x468] sm:$0xff] }
 0x15e   :  { %2218 = vmatpush1.bf16.msra.mxu0 %v2217_v41  ;;  %v2237_v41 = vpack.c.bf16 %v456_v31, %v452_v30  ;;  %v492_v30 = vld [vmem:[#allocation7 + $0x440] sm:$0xff] }
 0x15f   :  { %2346 = vmatpush1.bf16.msra.mxu1 %v2345_v42  ;;  %2220 = vmatprep.subr.bf16.mxu0 %v2219_v43  ;;  %v2365_v42 = vpack.c.bf16 %v458_v35, %v454_v32  ;;  %v2239_v43 = vpack.c.bf16 %v465_v39, %v461_v38  ;;  %v496_v31 = vld [vmem:[#allocation7 + $0x460] sm:$0xff]  ;;  %v494_v32 = vld [vmem:[#allocation7 + $0x450] sm:$0xff]  ;;  %v501_v38 = vld [vmem:[#allocation7 + $0x488] sm:$0xff] }
 0x160   :  { %2348 = vmatprep.subr.bf16.mxu1 %v2347_v47  ;;  %v2367_v47 = vpack.c.bf16 %v467_v37, %v463_v40  ;;  %v498_v35 = vld [vmem:[#allocation7 + $0x470] sm:$0xff]  ;;  %v505_v39 = vld [vmem:[#allocation7 + $0x4a8] sm:$0xff]  ;;  %v503_v37 = vld [vmem:[#allocation7 + $0x498] sm:$0xff] }
 0x162   :  { %2222 = vmatpush1.bf16.msra.mxu0 %v2221_v54  ;;  %v2241_v54 = vpack.c.bf16 %v464_v45, %v460_v44  ;;  %v2259_v44 = vpack.c.bf16 %v505_v39, %v501_v38  ;;  %v500_v45 = vld [vmem:[#allocation7 + $0x480] sm:$0xff]  ;;  %v541_v38 = vld [vmem:[#allocation7 + $0x5c8] sm:$0xff] }
 0x163   :  { %2350 = vmatpush1.bf16.msra.mxu1 %v2349_v55  ;;  %2224 = vmatprep.subr.bf16.mxu0 %v2223_v56  ;;  %v2369_v55 = vpack.c.bf16 %v466_v49, %v462_v46  ;;  %v2243_v56 = vpack.c.bf16 %v473_v51, %v469_v50  ;;  %v504_v46 = vld [vmem:[#allocation7 + $0x4a0] sm:$0xff]  ;;  %v506_v50 = vld [vmem:[#allocation7 + $0x4b0] sm:$0xff]  ;;  %v509_v51 = vld [vmem:[#allocation7 + $0x4c8] sm:$0xff] }
 0x164   :  { %2352 = vmatprep.subr.bf16.mxu1 %v2351_v62  ;;  %v2371_v62 = vpack.c.bf16 %v475_v53, %v471_v52  ;;  %v513_v52 = vld [vmem:[#allocation7 + $0x4e8] sm:$0xff]  ;;  %v511_v53 = vld [vmem:[#allocation7 + $0x4d8] sm:$0xff] }
 0x165   :  { %v545_v39 = vld [vmem:[#allocation7 + $0x5e8] sm:$0xff] }
 0x166   :  { %2226 = vmatpush1.bf16.msra.mxu0 %v2225_v59  ;;  %v2245_v59 = vpack.c.bf16 %v472_v58, %v468_v57  ;;  %v508_v57 = vld [vmem:[#allocation7 + $0x4c0] sm:$0xff] }
 0x167   :  { %2354 = vmatpush1.bf16.msra.mxu1 %v2353_v60  ;;  %2228 = vmatprep.subr.bf16.mxu0 %v2227_v3  ;;  %v2373_v60 = vpack.c.bf16 %v474_v63, %v470_v61  ;;  %v2247_v3 = vpack.c.bf16 %v481_v1, %v477_v0  ;;  %v512_v58 = vld [vmem:[#allocation7 + $0x4e0] sm:$0xff]  ;;  %v510_v61 = vld [vmem:[#allocation7 + $0x4d0] sm:$0xff]  ;;  %v517_v0 = vld [vmem:[#allocation7 + $0x508] sm:$0xff] }
 0x168   :  { %2356 = vmatprep.subr.bf16.mxu1 %v2355_v8  ;;  %v2375_v8 = vpack.c.bf16 %v483_v11, %v479_v2  ;;  %v514_v63 = vld [vmem:[#allocation7 + $0x4f0] sm:$0xff]  ;;  %v521_v1 = vld [vmem:[#allocation7 + $0x528] sm:$0xff]  ;;  %v519_v2 = vld [vmem:[#allocation7 + $0x518] sm:$0xff] }
 0x169   :  { %v523_v11 = vld [vmem:[#allocation7 + $0x538] sm:$0xff] }
 0x16a   :  { %2230 = vmatpush1.bf16.msra.mxu0 %v2229_v15  ;;  %v1175_v15 = vcombine.high %v2845_v36, %v2845_v36  ;;  %v495_v36 = vld [vmem:[#allocation7 + $0x458] sm:$0xff] }
 0x16b   :  { %2358 = vmatpush1.bf16.msra.mxu1 %v2357_v16  ;;  %2232 = vmatprep.subr.bf16.mxu0 %v2231_v17  ;;  %v2249_v16 = vpack.c.bf16 %v480_v5, %v476_v4  ;;  %v2377_v17 = vpack.c.bf16 %v482_v9, %v478_v7  ;;  %v516_v4 = vld [vmem:[#allocation7 + $0x500] sm:$0xff]  ;;  %v518_v7 = vld [vmem:[#allocation7 + $0x510] sm:$0xff] }
 0x16c   :  { %2360 = vmatprep.subr.bf16.mxu1 %v2359_v21  ;;  %v2379_v21 = vpack.c.bf16 %v491_v14, %v487_v13  ;;  %v2867_v24 = vrot.slane %v1175_v15, %v2832_v48  ;;  %v520_v5 = vld [vmem:[#allocation7 + $0x520] sm:$0xff]  ;;  %v522_v9 = vld [vmem:[#allocation7 + $0x530] sm:$0xff]  ;;  %v527_v13 = vld [vmem:[#allocation7 + $0x558] sm:$0xff] }
 0x16d   :  { %v531_v14 = vld [vmem:[#allocation7 + $0x578] sm:$0xff]  ;;  %v2269_v15 = vpack.c.bf16 %v520_v5, %v516_v4  ;;  %v558_v4 = vld [vmem:[#allocation7 + $0x650] sm:$0xff] }
 0x16e   :  { %2234 = vmatpush1.bf16.msra.mxu0 %v2233_v27  ;;  %v2253_v27 = vpack.c.bf16 %v488_v20, %v484_v19  ;;  %v1191_v48 = vcombine.high %v2867_v24, %v2867_v24  ;;  %v528_v19 = vld [vmem:[#allocation7 + $0x560] sm:$0xff]  ;;  %v526_v20 = vld [vmem:[#allocation7 + $0x550] sm:$0xff] }
 0x16f   :  { %2362 = vmatpush1.bf16.msra.mxu1 %v2361_v28  ;;  %2236 = vmatprep.subr.bf16.mxu0 %v2235_v29  ;;  %v499_v28 = vld [vmem:[#allocation7 + $0x478] sm:$0xff]  ;;  %v2381_v29 = vpack.c.bf16 %v490_v23, %v486_v22  ;;  %v530_v22 = vld [vmem:[#allocation7 + $0x570] sm:$0xff]  ;;  %v533_v23 = vld [vmem:[#allocation7 + $0x588] sm:$0xff] }
 0x170   :  { %2364 = vmatprep.subr.bf16.mxu1 %v2363_v34  ;;  %v2255_v34 = vpack.c.bf16 %v497_v26, %v493_v25  ;;  %v2383_v40 = vpack.c.bf16 %v499_v28, %v495_v36  ;;  %v537_v25 = vld [vmem:[#allocation7 + $0x5a8] sm:$0xff]  ;;  %v535_v26 = vld [vmem:[#allocation7 + $0x598] sm:$0xff]  ;;  %v2401_v28 = vpack.c.bf16 %v530_v22, %v526_v20  ;;  %v570_v20 = vld [vmem:[#allocation7 + $0x6b0] sm:$0xff] }
 0x171   :  { %v577_v22 = vld [vmem:[#allocation7 + $0x6e8] sm:$0xff] }
 0x172   :  { %2238 = vmatpush1.bf16.msra.mxu0 %v2237_v41  ;;  %v507_v41 = vld [vmem:[#allocation7 + $0x4b8] sm:$0xff] }
 0x173   :  { %2366 = vmatpush1.bf16.msra.mxu1 %v2365_v42  ;;  %2240 = vmatprep.subr.bf16.mxu0 %v2239_v43  ;;  %v2257_v42 = vpack.c.bf16 %v496_v31, %v492_v30  ;;  %v2385_v43 = vpack.c.bf16 %v498_v35, %v494_v32  ;;  %v2387_v49 = vpack.c.bf16 %v507_v41, %v503_v37  ;;  %v532_v30 = vld [vmem:[#allocation7 + $0x580] sm:$0xff]  ;;  %v534_v32 = vld [vmem:[#allocation7 + $0x590] sm:$0xff] }
 0x174   :  { %2368 = vmatprep.subr.bf16.mxu1 %v2367_v47  ;;  %v502_v47 = vld [vmem:[#allocation7 + $0x490] sm:$0xff]  ;;  %v536_v31 = vld [vmem:[#allocation7 + $0x5a0] sm:$0xff] }
 0x175   :  { %v538_v35 = vld [vmem:[#allocation7 + $0x5b0] sm:$0xff]  ;;  %v2277_v37 = vpack.c.bf16 %v536_v31, %v532_v30 }
 0x176   :  { %2242 = vmatpush1.bf16.msra.mxu0 %v2241_v54  ;;  %v515_v54 = vld [vmem:[#allocation7 + $0x4f8] sm:$0xff]  ;;  %v2405_v41 = vpack.c.bf16 %v538_v35, %v534_v32  ;;  %v574_v30 = vld [vmem:[#allocation7 + $0x6d0] sm:$0xff]  ;;  %v585_v35 = vld [vmem:[#allocation7 + $0x728] sm:$0xff] }
 0x177   :  { %2370 = vmatpush1.bf16.msra.mxu1 %v2369_v55  ;;  %2244 = vmatprep.subr.bf16.mxu0 %v2243_v56  ;;  %v2389_v55 = vpack.c.bf16 %v506_v50, %v502_v47  ;;  %v2263_v56 = vpack.c.bf16 %v513_v52, %v509_v51  ;;  %v546_v47 = vld [vmem:[#allocation7 + $0x5f0] sm:$0xff]  ;;  %v553_v50 = vld [vmem:[#allocation7 + $0x628] sm:$0xff]  ;;  %v551_v51 = vld [vmem:[#allocation7 + $0x618] sm:$0xff] }
 0x178   :  { %2372 = vmatprep.subr.bf16.mxu1 %v2371_v62  ;;  %v2391_v62 = vpack.c.bf16 %v515_v54, %v511_v53  ;;  %v555_v52 = vld [vmem:[#allocation7 + $0x638] sm:$0xff]  ;;  %v578_v32 = vld [vmem:[#allocation7 + $0x6f0] sm:$0xff] }
 0x17a   :  { %2246 = vmatpush1.bf16.msra.mxu0 %v2245_v59  ;;  %v2265_v59 = vpack.c.bf16 %v512_v58, %v508_v57  ;;  %v550_v57 = vld [vmem:[#allocation7 + $0x610] sm:$0xff]  ;;  %v2411_v58 = vpack.c.bf16 %v555_v52, %v551_v51 }
 0x17b   :  { %2374 = vmatpush1.bf16.msra.mxu1 %v2373_v60  ;;  %2248 = vmatprep.subr.bf16.mxu0 %v2247_v3  ;;  %v2393_v60 = vpack.c.bf16 %v514_v63, %v510_v61  ;;  %v2267_v3 = vpack.c.bf16 %v521_v1, %v517_v0  ;;  %v554_v61 = vld [vmem:[#allocation7 + $0x630] sm:$0xff]  ;;  %v561_v63 = vld [vmem:[#allocation7 + $0x668] sm:$0xff]  ;;  %v559_v0 = vld [vmem:[#allocation7 + $0x658] sm:$0xff] }
 0x17c   :  { %2376 = vmatprep.subr.bf16.mxu1 %v2375_v8  ;;  %v2395_v8 = vpack.c.bf16 %v523_v11, %v519_v2  ;;  %v563_v1 = vld [vmem:[#allocation7 + $0x678] sm:$0xff]  ;;  %v2413_v11 = vpack.c.bf16 %v554_v61, %v550_v57  ;;  %v594_v57 = vld [vmem:[#allocation7 + $0x770] sm:$0xff]  ;;  %v601_v61 = vld [vmem:[#allocation7 + $0x7a8] sm:$0xff] }
 0x17d   :  { %v2415_v5 = vpack.c.bf16 %v563_v1, %v559_v0 }
 0x17e   :  { %2250 = vmatpush1.bf16.msra.mxu0 %v2249_v16  ;;  %v2397_v16 = vpack.c.bf16 %v522_v9, %v518_v7  ;;  %v562_v7 = vld [vmem:[#allocation7 + $0x670] sm:$0xff]  ;;  %v569_v9 = vld [vmem:[#allocation7 + $0x6a8] sm:$0xff] }
 0x17f   :  { %2378 = vmatpush1.bf16.msra.mxu1 %v2377_v17  ;;  %2252 = vmatprep.subr.bf16.mxu0 %v2251_v18  ;;  %v2271_v17 = vpack.c.bf16 %v529_v12, %v525_v10  ;;  %v524_v18 = vld [vmem:[#allocation7 + $0x540] sm:$0xff]  ;;  %v567_v10 = vld [vmem:[#allocation7 + $0x698] sm:$0xff] }
 0x180   :  { %2380 = vmatprep.subr.bf16.mxu1 %v2379_v21  ;;  %v2399_v21 = vpack.c.bf16 %v531_v14, %v527_v13  ;;  %v2273_v36 = vpack.c.bf16 %v528_v19, %v524_v18  ;;  %v571_v12 = vld [vmem:[#allocation7 + $0x6b8] sm:$0xff]  ;;  %v2417_v14 = vpack.c.bf16 %v562_v7, %v558_v4  ;;  %v566_v18 = vld [vmem:[#allocation7 + $0x690] sm:$0xff]  ;;  %v609_v7 = vld [vmem:[#allocation7 + $0x7e8] sm:$0xff] }
 0x181   :  { %1261 = vmatmul.mubr.f32.vlgmr.msra.gmra.mrb[0].mxu0 %v2858_v6  ;;  %v2419_v19 = vpack.c.bf16 %v571_v12, %v567_v10  ;;  %v602_v4 = vld [vmem:[#allocation7 + $0x7b0] sm:$0xff] }
 0x182   :  { %1403 = vmatmul.mubr.f32.vlgmr.msra.gmra.mrb[0].mxu1 %v2858_v6  ;;  %2254 = vmatpush1.bf16.msra.mxu0 %v2253_v27  ;;  %v2261_v6 = vpack.c.bf16 %v504_v46, %v500_v45  ;;  %v539_v27 = vld [vmem:[#allocation7 + $0x5b8] sm:$0xff]  ;;  %v542_v45 = vld [vmem:[#allocation7 + $0x5d0] sm:$0xff] }
 0x183   :  { %1331 = vmatprep.mubr.f32.mxu0 %v1191_v48  ;;  %2382 = vmatpush1.bf16.msra.mxu1 %v2381_v29  ;;  %v2275_v29 = vpack.c.bf16 %v537_v25, %v533_v23  ;;  %v2409_v54 = vpack.c.bf16 %v546_v47, %v542_v45  ;;  %v575_v23 = vld [vmem:[#allocation7 + $0x6d8] sm:$0xff]  ;;  %v586_v45 = vld [vmem:[#allocation7 + $0x730] sm:$0xff]  ;;  %v593_v47 = vld [vmem:[#allocation7 + $0x768] sm:$0xff] }
 0x184   :  { %1473 = vmatprep.mubr.f32.mxu1 %v1191_v48  ;;  %2256 = vmatprep.subr.bf16.mxu0 %v2255_v34  ;;  %v2403_v34 = vpack.c.bf16 %v539_v27, %v535_v26  ;;  %v543_v48 = vld [vmem:[#allocation7 + $0x5d8] sm:$0xff]  ;;  %v2421_v27 = vpack.c.bf16 %v570_v20, %v566_v18  ;;  %v610_v18 = vld [vmem:[#allocation7 + $0x7f0] sm:$0xff]  ;;  %v1527_v20 = vld [vmem:[%s3111_s4 + $0x88] sm:$0xff] }
 0x185   :  { %2384 = vmatprep.subr.bf16.mxu1 %v2383_v40  ;;  %v547_v40 = vld [vmem:[#allocation7 + $0x5f8] sm:$0xff] }
 0x186   :  { %2258 = vmatpush1.bf16.msra.mxu0 %v2257_v42  ;;  %v2279_v42 = vpack.c.bf16 %v545_v39, %v541_v38  ;;  %v2407_v46 = vpack.c.bf16 %v547_v40, %v543_v48  ;;  %v579_v25 = vld [vmem:[#allocation7 + $0x6f8] sm:$0xff]  ;;  %v2425_v40 = vpack.c.bf16 %v578_v32, %v574_v30  ;;  %v1543_v30 = vld [vmem:[%s3111_s4 + $0x108] sm:$0xff] }
 0x187   :  { %2386 = vmatpush1.bf16.msra.mxu1 %v2385_v43  ;;  %2260 = vmatprep.subr.bf16.mxu0 %v2259_v44  ;;  %v540_v43 = vld [vmem:[#allocation7 + $0x5c0] sm:$0xff]  ;;  %v2423_v31 = vpack.c.bf16 %v579_v25, %v575_v23  ;;  %v583_v38 = vld [vmem:[#allocation7 + $0x718] sm:$0xff] }
 0x188   :  { %2388 = vmatprep.subr.bf16.mxu1 %v2387_v49  ;;  %v544_v44 = vld [vmem:[#allocation7 + $0x5e0] sm:$0xff]  ;;  %v549_v49 = vld [vmem:[#allocation7 + $0x608] sm:$0xff]  ;;  %v587_v39 = vld [vmem:[#allocation7 + $0x738] sm:$0xff] }
 0x189   :  { %v2281_v53 = vpack.c.bf16 %v544_v44, %v540_v43  ;;  %v582_v43 = vld [vmem:[#allocation7 + $0x710] sm:$0xff]  ;;  %v2427_v44 = vpack.c.bf16 %v587_v39, %v583_v38  ;;  %v1529_v32 = vld [vmem:[%s3111_s4 + $0x98] sm:$0xff] }
 0x18a   :  { %2262 = vmatpush1.bf16.msra.mxu0 %v2261_v6  ;;  %v2283_v6 = vpack.c.bf16 %v553_v50, %v549_v49  ;;  %v591_v49 = vld [vmem:[#allocation7 + $0x758] sm:$0xff]  ;;  %v2429_v52 = vpack.c.bf16 %v586_v45, %v582_v43  ;;  %v1531_v45 = vld [vmem:[%s3111_s4 + $0xa8] sm:$0xff] }
 0x18b   :  { %2390 = vmatpush1.bf16.msra.mxu1 %v2389_v55  ;;  %2264 = vmatprep.subr.bf16.mxu0 %v2263_v56  ;;  %v548_v55 = vld [vmem:[#allocation7 + $0x600] sm:$0xff]  ;;  %v595_v50 = vld [vmem:[#allocation7 + $0x778] sm:$0xff] }
 0x18c   :  { %2392 = vmatprep.subr.bf16.mxu1 %v2391_v62  ;;  %v552_v56 = vld [vmem:[#allocation7 + $0x620] sm:$0xff]  ;;  %v557_v62 = vld [vmem:[#allocation7 + $0x648] sm:$0xff]  ;;  %v1545_v43 = vld [vmem:[%s3111_s4 + $0x118] sm:$0xff] }
 0x18d   :  { %v2285_v2 = vpack.c.bf16 %v552_v56, %v548_v55  ;;  %v590_v55 = vld [vmem:[#allocation7 + $0x750] sm:$0xff]  ;;  %v2431_v56 = vpack.c.bf16 %v595_v50, %v591_v49 }
 0x18e   :  { %2266 = vmatpush1.bf16.msra.mxu0 %v2265_v59  ;;  %v2287_v59 = vpack.c.bf16 %v561_v63, %v557_v62  ;;  %v599_v62 = vld [vmem:[#allocation7 + $0x798] sm:$0xff]  ;;  %v2433_v1 = vpack.c.bf16 %v594_v57, %v590_v55  ;;  %v1532_v55 = vld [vmem:[%s3111_s4 + $0xb0] sm:$0xff] }
 0x18f   :  { %2394 = vmatpush1.bf16.msra.mxu1 %v2393_v60  ;;  %2268 = vmatprep.subr.bf16.mxu0 %v2267_v3  ;;  %v556_v60 = vld [vmem:[#allocation7 + $0x640] sm:$0xff]  ;;  %v603_v63 = vld [vmem:[#allocation7 + $0x7b8] sm:$0xff]  ;;  %v1564_v57 = vld [vmem:[%s3111_s4 + $0x1b0] sm:$0xff] }
 0x190   :  { %2396 = vmatprep.subr.bf16.mxu1 %v2395_v8  ;;  %v560_v3 = vld [vmem:[#allocation7 + $0x660] sm:$0xff]  ;;  %v565_v8 = vld [vmem:[#allocation7 + $0x688] sm:$0xff] }
 0x191   :  { %v2289_v13 = vpack.c.bf16 %v560_v3, %v556_v60  ;;  %v598_v60 = vld [vmem:[#allocation7 + $0x790] sm:$0xff]  ;;  %v2435_v3 = vpack.c.bf16 %v603_v63, %v599_v62 }
 0x192   :  { %2270 = vmatpush1.bf16.msra.mxu0 %v2269_v15  ;;  %v2291_v15 = vpack.c.bf16 %v569_v9, %v565_v8  ;;  %v607_v8 = vld [vmem:[#allocation7 + $0x7d8] sm:$0xff]  ;;  %v2437_v12 = vpack.c.bf16 %v602_v4, %v598_v60  ;;  %v1534_v60 = vld [vmem:[%s3111_s4 + $0xc0] sm:$0xff] }
 0x193   :  { %2398 = vmatpush1.bf16.msra.mxu1 %v2397_v16  ;;  %2272 = vmatprep.subr.bf16.mxu0 %v2271_v17  ;;  %v564_v16 = vld [vmem:[#allocation7 + $0x680] sm:$0xff]  ;;  %v611_v9 = vld [vmem:[#allocation7 + $0x7f8] sm:$0xff] }
 0x194   :  { %2400 = vmatprep.subr.bf16.mxu1 %v2399_v21  ;;  %v568_v17 = vld [vmem:[#allocation7 + $0x6a0] sm:$0xff]  ;;  %v573_v21 = vld [vmem:[#allocation7 + $0x6c8] sm:$0xff] }
 0x195   :  { %v2293_v26 = vpack.c.bf16 %v568_v17, %v564_v16  ;;  %v606_v16 = vld [vmem:[#allocation7 + $0x7d0] sm:$0xff]  ;;  %v2439_v17 = vpack.c.bf16 %v611_v9, %v607_v8  ;;  %v1566_v4 = vld [vmem:[%s3111_s4 + $0x1c0] sm:$0xff] }
 0x196   :  { %2274 = vmatpush1.bf16.msra.mxu0 %v2273_v36  ;;  %v2295_v36 = vpack.c.bf16 %v577_v22, %v573_v21  ;;  %v1558_v21 = vld [vmem:[%s3111_s4 + $0x180] sm:$0xff]  ;;  %v1559_v22 = vld [vmem:[%s3111_s4 + $0x188] sm:$0xff]  ;;  %v2441_v25 = vpack.c.bf16 %v610_v18, %v606_v16  ;;  %v1536_v16 = vld [vmem:[%s3111_s4 + $0xd0] sm:$0xff] }
 0x197   :  { %2402 = vmatpush1.bf16.msra.mxu1 %v2401_v28  ;;  %2276 = vmatprep.subr.bf16.mxu0 %v2275_v29  ;;  %v572_v28 = vld [vmem:[#allocation7 + $0x6c0] sm:$0xff]  ;;  %v1568_v18 = vld [vmem:[%s3111_s4 + $0x1d0] sm:$0xff] }
 0x198   :  { %2404 = vmatprep.subr.bf16.mxu1 %v2403_v34  ;;  %v576_v29 = vld [vmem:[#allocation7 + $0x6e0] sm:$0xff]  ;;  %v581_v34 = vld [vmem:[#allocation7 + $0x708] sm:$0xff] }
 0x199   :  { %v2297_v48 = vpack.c.bf16 %v576_v29, %v572_v28  ;;  %v1542_v28 = vld [vmem:[%s3111_s4 + $0x100] sm:$0xff]  ;;  %v2475_v29 = vpack.c.bf16 %v1559_v22, %v1558_v21 }
 0x19a   :  { %2278 = vmatpush1.bf16.msra.mxu0 %v2277_v37  ;;  %v2299_v37 = vpack.c.bf16 %v585_v35, %v581_v34  ;;  %v1560_v34 = vld [vmem:[%s3111_s4 + $0x190] sm:$0xff]  ;;  %v1561_v35 = vld [vmem:[%s3111_s4 + $0x198] sm:$0xff]  ;;  %v2477_v39 = vpack.c.bf16 %v1543_v30, %v1542_v28  ;;  %v1538_v28 = vld [vmem:[%s3111_s4 + $0xe0] sm:$0xff] }
 0x19b   :  { %2406 = vmatpush1.bf16.msra.mxu1 %v2405_v41  ;;  %2280 = vmatprep.subr.bf16.mxu0 %v2279_v42  ;;  %v580_v41 = vld [vmem:[#allocation7 + $0x700] sm:$0xff] }
 0x19c   :  { %2408 = vmatprep.subr.bf16.mxu1 %v2407_v46  ;;  %v584_v42 = vld [vmem:[#allocation7 + $0x720] sm:$0xff]  ;;  %v589_v46 = vld [vmem:[#allocation7 + $0x748] sm:$0xff] }
 0x19d   :  { %v2301_v51 = vpack.c.bf16 %v584_v42, %v580_v41  ;;  %v1544_v41 = vld [vmem:[%s3111_s4 + $0x110] sm:$0xff]  ;;  %v2479_v42 = vpack.c.bf16 %v1561_v35, %v1560_v34  ;;  %v1570_v30 = vld [vmem:[%s3111_s4 + $0x1e0] sm:$0xff] }
 0x19e   :  { %2282 = vmatpush1.bf16.msra.mxu0 %v2281_v53  ;;  %v2303_v53 = vpack.c.bf16 %v593_v47, %v589_v46  ;;  %v1562_v46 = vld [vmem:[%s3111_s4 + $0x1a0] sm:$0xff]  ;;  %v1563_v47 = vld [vmem:[%s3111_s4 + $0x1a8] sm:$0xff]  ;;  %v2481_v50 = vpack.c.bf16 %v1545_v43, %v1544_v41  ;;  %v1540_v43 = vld [vmem:[%s3111_s4 + $0xf0] sm:$0xff] }
 0x19f   :  { %2410 = vmatpush1.bf16.msra.mxu1 %v2409_v54  ;;  %2284 = vmatprep.subr.bf16.mxu0 %v2283_v6  ;;  %v588_v54 = vld [vmem:[#allocation7 + $0x740] sm:$0xff]  ;;  %v1555_v41 = vld [vmem:[%s3111_s4 + $0x168] sm:$0xff] }
 0x1a0   :  { %2412 = vmatprep.subr.bf16.mxu1 %v2411_v58  ;;  %v592_v6 = vld [vmem:[#allocation7 + $0x760] sm:$0xff]  ;;  %v597_v58 = vld [vmem:[#allocation7 + $0x788] sm:$0xff] }
 0x1a1   :  { %v2305_v0 = vpack.c.bf16 %v592_v6, %v588_v54  ;;  %v1546_v54 = vld [vmem:[%s3111_s4 + $0x120] sm:$0xff]  ;;  %v1547_v6 = vld [vmem:[%s3111_s4 + $0x128] sm:$0xff] }
 0x1a2   :  { %2286 = vmatpush1.bf16.msra.mxu0 %v2285_v2  ;;  %v2307_v2 = vpack.c.bf16 %v601_v61, %v597_v58  ;;  %v1565_v58 = vld [vmem:[%s3111_s4 + $0x1b8] sm:$0xff]  ;;  %v2485_v62 = vpack.c.bf16 %v1547_v6, %v1546_v54  ;;  %v2698_v6 = vmov 0.0|0.0  }
 0x1a3   :  { %2414 = vmatpush1.bf16.msra.mxu1 %v2413_v11  ;;  %2288 = vmatprep.subr.bf16.mxu0 %v2287_v59  ;;  %v596_v11 = vld [vmem:[#allocation7 + $0x780] sm:$0xff]  ;;  %v1557_v54 = vld [vmem:[%s3111_s4 + $0x178] sm:$0xff] }
 0x1a4   :  { %2416 = vmatprep.subr.bf16.mxu1 %v2415_v5  ;;  %v600_v59 = vld [vmem:[#allocation7 + $0x7a0] sm:$0xff]  ;;  %v605_v5 = vld [vmem:[#allocation7 + $0x7c8] sm:$0xff] }
 0x1a5   :  { %v2309_v10 = vpack.c.bf16 %v600_v59, %v596_v11  ;;  %v2487_v11 = vpack.c.bf16 %v1565_v58, %v1564_v57  ;;  %v1549_v59 = vld [vmem:[%s3111_s4 + $0x138] sm:$0xff]  ;;  %v1492_v57 = vsub.s32 2, %v2826_v33  ;;  %v1488_v58 = vsub.s32 1, %v2826_v33 }
 0x1a6   :  { %2290 = vmatpush1.bf16.msra.mxu0 %v2289_v13  ;;  %v2311_v13 = vpack.c.bf16 %v609_v7, %v605_v5  ;;  %v1567_v5 = vld [vmem:[%s3111_s4 + $0x1c8] sm:$0xff] }
 0x1a7   :  { %2418 = vmatpush1.bf16.msra.mxu1 %v2417_v14  ;;  %2292 = vmatprep.subr.bf16.mxu0 %v2291_v15  ;;  %v604_v14 = vld [vmem:[#allocation7 + $0x7c0] sm:$0xff] }
 0x1a8   :  { %2420 = vmatprep.subr.bf16.mxu1 %v2419_v19  ;;  %v608_v15 = vld [vmem:[#allocation7 + $0x7e0] sm:$0xff] }
 0x1a9   :  { %v1526_v19 = vld [vmem:[%s3111_s4 + $0x80] sm:$0xff]  ;;  %v2313_v23 = vpack.c.bf16 %v608_v15, %v604_v14  ;;  %v2491_v14 = vpack.c.bf16 %v1567_v5, %v1566_v4  ;;  %v1551_v15 = vld [vmem:[%s3111_s4 + $0x148] sm:$0xff] }
 0x1aa   :  { %2294 = vmatpush1.bf16.msra.mxu0 %v2293_v26  ;;  %v2443_v26 = vpack.c.bf16 %v1527_v20, %v1526_v19  ;;  %v1569_v19 = vld [vmem:[%s3111_s4 + $0x1d8] sm:$0xff]  ;;  %v1723_v4 = vld [vmem:[%s3113_s6 + $0x8] sm:$0xff] }
 0x1ab   :  { %2422 = vmatpush1.bf16.msra.mxu1 %v2421_v27  ;;  %2296 = vmatprep.subr.bf16.mxu0 %v2295_v36  ;;  %v1510_v27 = vld [vmem:[%s3111_s4] sm:$0xff]  ;;  %v1511_v36 = vld [vmem:[%s3111_s4 + $0x8] sm:$0xff] }
 0x1ac   :  { %2424 = vmatprep.subr.bf16.mxu1 %v2423_v31  ;;  %v1528_v31 = vld [vmem:[%s3111_s4 + $0x90] sm:$0xff]  ;;  %v2445_v38 = vpack.c.bf16 %v1511_v36, %v1510_v27  ;;  %v2495_v27 = vpack.c.bf16 %v1569_v19, %v1568_v18  ;;  %v1553_v36 = vld [vmem:[%s3111_s4 + $0x158] sm:$0xff]  ;;  %v1726_v18 = vld [vmem:[%s3113_s6 + $0x20] sm:$0xff] }
 0x1ad   :  { %v1727_v19 = vld [vmem:[%s3113_s6 + $0x28] sm:$0xff] }
 0x1ae   :  { %2298 = vmatpush1.bf16.msra.mxu0 %v2297_v48  ;;  %v2447_v48 = vpack.c.bf16 %v1529_v32, %v1528_v31  ;;  %v1571_v31 = vld [vmem:[%s3111_s4 + $0x1e8] sm:$0xff] }
 0x1af   :  { %2426 = vmatpush1.bf16.msra.mxu1 %v2425_v40  ;;  %2300 = vmatprep.subr.bf16.mxu0 %v2299_v37  ;;  %v1512_v40 = vld [vmem:[%s3111_s4 + $0x10] sm:$0xff]  ;;  %v1513_v37 = vld [vmem:[%s3111_s4 + $0x18] sm:$0xff] }
 0x1b0   :  { %2428 = vmatprep.subr.bf16.mxu1 %v2427_v44  ;;  %v1530_v44 = vld [vmem:[%s3111_s4 + $0xa0] sm:$0xff]  ;;  %v2449_v49 = vpack.c.bf16 %v1513_v37, %v1512_v40 }
 0x1b1   :  { %v1554_v40 = vld [vmem:[%s3111_s4 + $0x160] sm:$0xff] }
 0x1b2   :  { %2302 = vmatpush1.bf16.msra.mxu0 %v2301_v51  ;;  %v2451_v51 = vpack.c.bf16 %v1531_v45, %v1530_v44  ;;  %v1541_v44 = vld [vmem:[%s3111_s4 + $0xf8] sm:$0xff]  ;;  %v1572_v45 = vld [vmem:[%s3111_s4 + $0x1f0] sm:$0xff] }
 0x1b3   :  { %2430 = vmatpush1.bf16.msra.mxu1 %v2429_v52  ;;  %2304 = vmatprep.subr.bf16.mxu0 %v2303_v53  ;;  %v1514_v52 = vld [vmem:[%s3111_s4 + $0x20] sm:$0xff]  ;;  %v1515_v53 = vld [vmem:[%s3111_s4 + $0x28] sm:$0xff] }
 0x1b4   :  { %2432 = vmatprep.subr.bf16.mxu1 %v2431_v56  ;;  %v1533_v56 = vld [vmem:[%s3111_s4 + $0xb8] sm:$0xff]  ;;  %v2453_v61 = vpack.c.bf16 %v1515_v53, %v1514_v52  ;;  %v1556_v53 = vld [vmem:[%s3111_s4 + $0x170] sm:$0xff] }
 0x1b5   :  { %v2455_v63 = vpack.c.bf16 %v1533_v56, %v1532_v55  ;;  %v1484_v55 = vsub.s32 0, %v2826_v33  ;;  %v1480_v56 = vld [vmem:[#allocation9] sm:$0xf] }
 0x1b6   :  { %2306 = vmatpush1.bf16.msra.mxu0 %v2305_v0  ;;  %v1516_v0 = vld [vmem:[%s3111_s4 + $0x30] sm:$0xff] }
 0x1b7   :  { %2434 = vmatpush1.bf16.msra.mxu1 %v2433_v1  ;;  %2308 = vmatprep.subr.bf16.mxu0 %v2307_v2  ;;  %v1517_v1 = vld [vmem:[%s3111_s4 + $0x38] sm:$0xff]  ;;  %v1548_v2 = vld [vmem:[%s3111_s4 + $0x130] sm:$0xff] }
 0x1b8   :  { %2436 = vmatprep.subr.bf16.mxu1 %v2435_v3  ;;  %v1535_v3 = vld [vmem:[%s3111_s4 + $0xc8] sm:$0xff]  ;;  %v2457_v7 = vpack.c.bf16 %v1517_v1, %v1516_v0  ;;  %v2489_v8 = vpack.c.bf16 %v1549_v59, %v1548_v2  ;;  %v1489_v0 = vrot.slane %v1480_v56, %v1488_v58 }
 0x1b9   :  { %v2459_v9 = vpack.c.bf16 %v1535_v3, %v1534_v60  ;;  %v1722_v3 = vld [vmem:[%s3113_s6] sm:$0xff] }
 0x1ba   :  { %2310 = vmatpush1.bf16.msra.mxu0 %v2309_v10  ;;  %v1518_v10 = vld [vmem:[%s3111_s4 + $0x40] sm:$0xff] }
 0x1bb   :  { %2438 = vmatpush1.bf16.msra.mxu1 %v2437_v12  ;;  %2312 = vmatprep.subr.bf16.mxu0 %v2311_v13  ;;  %v1519_v12 = vld [vmem:[%s3111_s4 + $0x48] sm:$0xff]  ;;  %v1550_v13 = vld [vmem:[%s3111_s4 + $0x140] sm:$0xff] }
 0x1bc   :  { %2440 = vmatprep.subr.bf16.mxu1 %v2439_v17  ;;  %v1537_v17 = vld [vmem:[%s3111_s4 + $0xd8] sm:$0xff]  ;;  %v2461_v20 = vpack.c.bf16 %v1519_v12, %v1518_v10  ;;  %v2493_v21 = vpack.c.bf16 %v1551_v15, %v1550_v13  ;;  %v2508_v10 = vpack.c.bf16 %v1723_v4, %v1722_v3 }
 0x1bd   :  { %v2463_v22 = vpack.c.bf16 %v1537_v17, %v1536_v16  ;;  %v1725_v15 = vld [vmem:[%s3113_s6 + $0x18] sm:$0xff] }
 0x1be   :  { %2314 = vmatpush1.bf16.msra.mxu0 %v2313_v23  ;;  %v1520_v23 = vld [vmem:[%s3111_s4 + $0x50] sm:$0xff] }
 0x1bf   :  { %2442 = vmatpush1.bf16.msra.mxu1 %v2441_v25  ;;  %2444 = vmatprep.subr.bf16.mxu0 %v2443_v26  ;;  %v1521_v25 = vld [vmem:[%s3111_s4 + $0x58] sm:$0xff]  ;;  %v1552_v26 = vld [vmem:[%s3111_s4 + $0x150] sm:$0xff] }
 0x1c0   :  { %2476 = vmatprep.subr.bf16.mxu1 %v2475_v29  ;;  %v1539_v29 = vld [vmem:[%s3111_s4 + $0xe8] sm:$0xff]  ;;  %v2465_v32 = vpack.c.bf16 %v1521_v25, %v1520_v23  ;;  %v2497_v34 = vpack.c.bf16 %v1553_v36, %v1552_v26  ;;  %v2700_v25 = vmov 0.0   ;;  %v1830_v36 = vld [vmem:[#allocation10] ss:$0 sm:$0xff] }
 0x1c1   :  { %1332 = vmatmul.mubr.f32.vlgmr.msra.gmra.mrb[0].mxu0 %v2867_v24  ;;  %v2467_v35 = vpack.c.bf16 %v1539_v29, %v1538_v28 }
 0x1c2   :  { %1474 = vmatmul.mubr.f32.vlgmr.msra.gmra.mrb[0].mxu1 %v2867_v24  ;;  %2446 = vmatpush3.bf16.msra.mxu0 %v2445_v38  ;;  %v2483_v24 = vpack.c.bf16 %v1563_v47, %v1562_v46  ;;  %v2499_v38 = vpack.c.bf16 %v1571_v31, %v1570_v30  ;;  %v2471_v46 = vpack.c.bf16 %v1541_v44, %v1540_v43  ;;  %v1573_v47 = vld [vmem:[%s3111_s4 + $0x1f8] sm:$0xff] }
 0x1c3   :  { %2478 = vmatpush3.bf16.msra.mxu1 %v2477_v39  ;;  %2448 = vmatprep.subr.bf16.mxu0 %v2447_v48  ;;  %v1522_v39 = vld [vmem:[%s3111_s4 + $0x60] sm:$0xff]  ;;  %v1523_v48 = vld [vmem:[%s3111_s4 + $0x68] sm:$0xff] }
 0x1c4   :  { %2480 = vmatprep.subr.bf16.mxu1 %v2479_v42  ;;  %v2469_v37 = vpack.c.bf16 %v1523_v48, %v1522_v39  ;;  %v2501_v42 = vpack.c.bf16 %v1555_v41, %v1554_v40 }
 0x1c6   :  { %2450 = vmatpush3.bf16.msra.mxu0 %v2449_v49  ;;  %v1524_v49 = vld [vmem:[%s3111_s4 + $0x70] sm:$0xff] }
 0x1c7   :  { %2482 = vmatpush3.bf16.msra.mxu1 %v2481_v50  ;;  %2452 = vmatprep.subr.bf16.mxu0 %v2451_v51  ;;  %v1525_v50 = vld [vmem:[%s3111_s4 + $0x78] sm:$0xff]  ;;  %v2503_v51 = vpack.c.bf16 %v1573_v47, %v1572_v45 }
 0x1c8   :  { %2484 = vmatprep.subr.bf16.mxu1 %v2483_v24  ;;  %v2473_v52 = vpack.c.bf16 %v1525_v50, %v1524_v49  ;;  %v2505_v24 = vpack.c.bf16 %v1557_v54, %v1556_v53 }
 0x1ca   :  { %2454 = vmatpush3.bf16.msra.mxu0 %v2453_v61  ;;  %v1496_v61 = vsub.s32 3, %v2826_v33 }
 0x1cb   :  { %2486 = vmatpush3.bf16.msra.mxu1 %v2485_v62  ;;  %2456 = vmatprep.subr.bf16.mxu0 %v2455_v63  ;;  %v1485_v62 = vrot.slane %v1480_v56, %v1484_v55  ;;  %v1493_v63 = vrot.slane %v1480_v56, %v1492_v57 }
 0x1cc   :  { %2488 = vmatprep.subr.bf16.mxu1 %v2487_v11  ;;  %v1497_v1 = vrot.slane %v1480_v56, %v1496_v61 }
 0x1ce   :  { %2458 = vmatpush3.bf16.msra.mxu0 %v2457_v7 }
 0x1cf   :  { %2490 = vmatpush3.bf16.msra.mxu1 %v2489_v8  ;;  %2460 = vmatprep.subr.bf16.mxu0 %v2459_v9 }
 0x1d0   :  { %2492 = vmatprep.subr.bf16.mxu1 %v2491_v14  ;;  %v1724_v14 = vld [vmem:[%s3113_s6 + $0x10] sm:$0xff] }
 0x1d1   :  { %v2511_v17 = vpack.c.bf16 %v1725_v15, %v1724_v14 }
 0x1d2   :  { %2462 = vmatpush3.bf16.msra.mxu0 %v2461_v20  ;;  %v2514_v20 = vpack.c.bf16 %v1727_v19, %v1726_v18 }
 0x1d3   :  { %2494 = vmatpush3.bf16.msra.mxu1 %v2493_v21  ;;  %2464 = vmatprep.subr.bf16.mxu0 %v2463_v22  ;;  %v1728_v21 = vld [vmem:[%s3113_s6 + $0x30] sm:$0xff]  ;;  %v1729_v22 = vld [vmem:[%s3113_s6 + $0x38] sm:$0xff]  ;;  %s1819_s6 = sshll.u32 %s2701_s24, 4  ;;  %s1820_s6 = int_to_ptr.vmem [resolvable:$true] %s1819_s6 }
 0x1d4   :  { %2496 = vmatprep.subr.bf16.mxu1 %v2495_v27  ;;  %v2517_v23 = vpack.c.bf16 %v1729_v22, %v1728_v21  ;;  %s2658_s25 = scalar_lea.vmem %s1820_s6, 32  ;;  %p2663_p13 = scmp.lt.s32.totalorder %s1820_s6, %s1820_s6 }
 0x1d5   :  { %p2659_p12 = scmp.ne.s32.totalorder %s1820_s6, %s2658_s25  ;;  %p2664_p0 = scmp.lt.s32.totalorder %s2658_s25, %s2658_s25 }
 0x1d6   :  { %2466 = vmatpush3.bf16.msra.mxu0 %v2465_v32 }
 0x1d7   :  { %2498 = vmatpush3.bf16.msra.mxu1 %v2497_v34  ;;  %2468 = vmatprep.subr.bf16.mxu0 %v2467_v35  ;;  %p2665_p1 = por %p2664_p0, %p2663_p13 }
 0x1d8   :  { %2500 = vmatprep.subr.bf16.mxu1 %v2499_v38  ;;  %v1831_v38 = vld [vmem:[#allocation12] ss:$0 sm:$0xff] }
 0x1d9   :  { %p2666_p2 = pnand %p2665_p1, %p2659_p12 }
 0x1da   :  { %2470 = vmatpush3.bf16.msra.mxu0 %v2469_v37 }
 0x1db   :  { %2502 = vmatpush3.bf16.msra.mxu1 %v2501_v42  ;;  %2472 = vmatprep.subr.bf16.mxu0 %v2471_v46 }
 0x1dc   :  { %2504 = vmatprep.subr.bf16.mxu1 %v2503_v51 }
 0x1de   :  { %2474 = vmatpush3.bf16.msra.mxu0 %v2473_v52 }
 0x1df   :  { %2506 = vmatpush3.bf16.msra.mxu1 %v2505_v24  ;;  %2507 = vmatprep.subr.bf16.mxu0 %v2698_v6 }
 0x294   :  { %v1333_v2 = vpop.f32.mrb[0].mxu0 }
 0x295   :  { %v1502_v11 = vadd.f32 %v1485_v62, %v1333_v2  ;;  %v1475_v59 = vpop.f32.mrb[0].mxu1  ;;  %v1335_v60 = vpop.f32.mrb[1].mxu0 }
 0x296   :  { %v1504_v5 = vadd.f32 %v1493_v63, %v1475_v59  ;;  %v1503_v7 = vadd.f32 %v1489_v0, %v1335_v60  ;;  %v1477_v8 = vpop.f32.mrb[1].mxu1 }
 0x297   :  { %v1505_v33 = vadd.f32 %v1497_v1, %v1477_v8  ;;  %v1506_v12 = vmax.f32 %v1502_v11, 0.0 }
 0x298   :  { %v1507_v9 = vmax.f32 %v1503_v7, 0.0  ;;  %v1508_v16 = vmax.f32 %v1504_v5, 0.0 }
 0x299   :  { %v1509_v13 = vmax.f32 %v1505_v33, 0.0 }
 0x29a   :  { %1645 = vmatprep.mubr.f32.mxu0 %v1507_v9 }
 0x29b   :  { %1715 = vmatprep.mubr.f32.mxu1 %v1509_v13  ;;  %1646 = vmatmul.mubr.f32.vlgmr.msra.gmra.mrb[2].mxu0 %v1506_v12 }
 0x29c   :  { %1716 = vmatmul.mubr.f32.vlgmr.msra.gmra.mrb[2].mxu1 %v1508_v16  ;;  %2509 = vmatpush3.bf16.msra.mxu0 %v2508_v10 }
 0x29d   :  { %2510 = vmatprep.subr.bf16.mxu0 %v2698_v6  ;;  %1928 = vmatprep.mubr.msk.f32.mxu0 %vm2699_vm6, %v2700_v25 }
 0x2a0   :  { %2512 = vmatpush3.bf16.msra.mxu0 %v2511_v17 }
 0x2a1   :  { %2513 = vmatprep.subr.bf16.mxu0 %v2698_v6 }
 0x2a4   :  { %2515 = vmatpush3.bf16.msra.mxu0 %v2514_v20 }
 0x2a5   :  { %2516 = vmatprep.subr.bf16.mxu0 %v2698_v6 }
 0x2a8   :  { %2518 = vmatpush3.bf16.msra.mxu0 %v2517_v23 }
 0x36e   :  { %v1865_v26 = vpop.f32.mrb[2].mxu0 }
 0x36f   :  { %v1900_v27 = vpop.f32.mrb[2].mxu1  ;;  %v1866_v28 = vpop.f32.mrb[3].mxu0 }
 0x370   :  { %v1867_v29 = vadd.f32 %v1866_v28, %v1865_v26  ;;  %v1901_v30 = vpop.f32.mrb[3].mxu1 }
 0x371   :  { %v1902_v31 = vadd.f32 %v1901_v30, %v1900_v27 }
 0x372   :  { %v1648_v32 = vadd.f32 %v1867_v29, %v1830_v36 }
 0x374   :  { %v1718_v34 = vadd.f32 %v1902_v31, %v1648_v32 }
 0x376   :  { %v1721_v35 = vmax.f32 %v1718_v34, 0.0 }
 0x378   :  { %1929 = vmatmul.mubr.msk.f32.vlgmr.msra.gmra.mrb[4].mxu0 %vm1737_vm7, %v1721_v35 }
 0x44b   :  { %v1807_v39 = vpop.f32.mrb[4].mxu0 }
 0x44c   :  { %v1808_v48 = vadd.f32 %v1831_v38, %v1807_v39  ;;  %v1930_v40 = vpop.f32.mrb[5].mxu0 }
 0x44e   :  { %1812 = vst.msk [vmem:[#allocation13] sm:$0x3] %vm1811_vm8, %v1808_v48 }
 0x44f   :  { %2669 = shalt.err (!%p2666_p2)
}
 0x450   :  { %s2670_s29 = scalar_lea.hbm %s3115_s8, 32 }
 0x451   :  { %p2671_p3 = scmp.ne.s32.totalorder %s3115_s8, %s2670_s29  ;;  %p2674_p4 = scmp.lt.u32.totalorder %s2670_s29, %s3115_s8 }
 0x453   :  { %p2676_p5 = pnand %p2674_p4, %p2671_p3 }
 0x455   :  { %2679 = shalt.err (!%p2676_p5)
}
 0x456   :  { %1822 = dma.vmem_to_hbm [thread:$0]  %s1820_s6, 32, %s3115_s8, [#allocation6]  }
 0x457   :  { %2686 = dma.done.wait [#allocation6], 32  }
 0x458   :  { %2687 = vsyncadd [#allocation6], 4294967264 }
 0x459   :  { %1826 = vsyncpa [#allocation5], 1 }
 0x45a   :  { %1827 = vsyncpa [#allocation8], 1 }
 0x45b   :  { %1828 = vsyncpa [#allocation11], 1 }
 0x45c   :  { %1829 = vsyncpa [#allocation6], 1 }

</bundles_post_ra>
